<compile_context>
chip_gen: v5e
topology: v5e:2x2
jax: 0.10.0
libtpu: 0.0.40
codegen_flags: <defaults>
</compile_context>

<pallas_src>
import functools

import jax
import jax.numpy as jnp
from jax.experimental import pallas as pl
from jax.experimental.pallas import tpu as pltpu

IGNORE_INDEX = -100


def _round_up(x, m):
    return ((x + m - 1) // m) * m


def _l2_normalize(v, l2_norm, eps=1e-6):
    if not l2_norm:
        return v
    return v / jnp.maximum(jnp.linalg.norm(v, axis=-1, keepdims=True), eps)


def _default_vmem_limit_bytes():
    # Size the scoped-VMEM request per generation (v5e/v6e: 128 MiB physical,
    # v7x: 64 MiB per TensorCore, and the broadcast table is resident in BOTH
    # cores when the row grid is 'parallel'), leaving headroom for the compiler.
    try:
        cap = pltpu.get_tpu_info().vmem_capacity_bytes
    except Exception:  # non-TPU / older runtime fallback
        cap = 128 * 1024 * 1024
    return min(int(cap * 3 // 5), 64 * 1024 * 1024)


def _sampled_softmax_kernel(x_ref, proj_ref, ids_ref, w_ref, out_ref, *,
                            temperature, l2_norm, n_samples):
    eps = 1e-6

    # Row block: normalize in f32, then feed the MXU in the table's dtype
    # (bf16).  The projection was normalized / transposed / cast once in the
    # wrapper, so no per-step cast happens here.
    x = x_ref[...]
    if l2_norm:
        xf = x.astype(jnp.float32)
        ssq = jnp.sum(xf * xf, axis=-1, keepdims=True)
        # x / max(||x||, eps) == x * rsqrt(max(||x||^2, eps^2)) -> EUP rsqrt
        x = xf * jax.lax.rsqrt(jnp.maximum(ssq, eps * eps))
    xc = x.astype(proj_ref.dtype)

    # (TN, V) scores on the MXU, contracting H, f32 accumulation.
    scores = jnp.dot(xc, proj_ref[...], preferred_element_type=jnp.float32)

    ids = ids_ref[...]                       # (TN, S+1) int32; column 0 = label
    tn, v = scores.shape
    viota = jax.lax.broadcasted_iota(jnp.int32, (tn, v), 1)
    inv_t = jnp.float32(1.0 / temperature)

    def select(j):
        # Pick column ids[:, j] out of the score matrix with ONE (TN, V)
        # compare/select/lane-reduce.  IGNORE_INDEX matches nothing -> 0.
        col = ids[:, j:j + 1]                                   # (TN, 1)
        return jnp.sum(jnp.where(viota == col, scores, 0.0),
                       axis=-1, keepdims=True)                  # (TN, 1)

    label_col = ids[:, 0:1]                                     # (TN, 1)
    ls = select(0) * inv_t                                      # target logit

    # Online logsumexp over [label, negatives]: only (TN, 1) carries persist,
    # so at most ~2 (TN, V) temporaries are live at any point (no spills).
    m = ls
    sumexp = jnp.ones_like(ls)                                  # exp(ls - m) = 1
    for j in range(1, n_samples + 1):
        sj = select(j)
        # Reject accidental hits of the positive id among the samples.
        reject = (ids[:, j:j + 1] == label_col).astype(jnp.float32)
        sj = (sj - 1.0e6 * reject) * inv_t
        m_new = jnp.maximum(m, sj)
        sumexp = sumexp * jnp.exp(m - m_new) + jnp.exp(sj - m_new)
        m = m_new
    per_row = m + jnp.log(sumexp) - ls                          # (TN, 1) CE loss

    valid = (label_col != IGNORE_INDEX).astype(jnp.float32)     # (TN, 1)
    w = w_ref[...]                                              # (TN, 1)

    loss_sum = jnp.sum(per_row * valid * w)
    valid_sum = jnp.sum(valid)
    # Single lane-dense (1, 2, 128) output block:
    #   sublane 0 = loss partial sum, sublane 1 = valid-row count.
    row = jax.lax.broadcasted_iota(jnp.int32, (1, 2, 128), 1)
    out_ref[...] = jnp.where(row == 0, loss_sum, valid_sum)


def sampled_softmax_loss(projection, inputs, labels, weights=None, *,
                         n_samples=16, temperature=1.0, l2_norm=True,
                         sample_key=None, row_tile=512,
                         compute_dtype=jnp.bfloat16):
    """JAX/Pallas equivalent of SampledSoftmaxLoss.forward (included_ids=[])."""
    H = inputs.shape[-1]
    V = projection.shape[0]
    x = inputs.reshape(-1, H)                 # streamed in the caller's dtype
    lab = labels.reshape(-1).astype(jnp.int32)
    N = x.shape[0]

    if sample_key is None:
        sample_key = jax.random.PRNGKey(1)
    # TODO(synk): torch.randint's RNG stream is not reproducible in JAX; using
    # jax.random.randint for deterministic uniform negative sampling instead.
    samples = jax.random.randint(sample_key, (N, n_samples), 0, V,
                                 dtype=jnp.int32)

    if weights is None:
        w = jnp.ones((N,), jnp.float32)
    else:
        w = weights.reshape(-1).astype(jnp.float32)
    w_total = jnp.sum(w)

    # Normalize the projection ONCE in f32 (V rows), not once per (row, sample).
    proj = _l2_normalize(projection.astype(jnp.float32), l2_norm)

    # Pad the hidden dim to a lane/MXU-friendly multiple of 128.  Zero padding
    # is exact for both the L2 norm and the dot products.
    H_pad = _round_up(H, 128)
    if H_pad != H:
        x = jnp.pad(x, ((0, 0), (0, H_pad - H)))
        proj = jnp.pad(proj, ((0, 0), (0, H_pad - H)))
    proj_t = proj.T.astype(compute_dtype)     # (H_pad, V): plain A @ B form

    # Pad rows to a multiple of the row tile; padded rows carry IGNORE_INDEX
    # labels / zero weight and are masked out inside the kernel.
    tile = max(16, min(row_tile, _round_up(N, 16)))
    tile = _round_up(tile, 16)
    n_pad = _round_up(N, tile)
    pad = n_pad - N
    if pad:
        x = jnp.pad(x, ((0, pad), (0, 0)))
        lab = jnp.pad(lab, (0, pad), constant_values=IGNORE_INDEX)
        samples = jnp.pad(samples, ((0, pad), (0, 0)))
        w = jnp.pad(w, (0, pad))
    num_tiles = n_pad // tile

    # Column 0 = label, columns 1..S = sampled negatives: one id stream and a
    # single in-kernel selection pass over (S+1) columns.
    ids = jnp.concatenate([lab[:, None], samples], axis=-1)     # (n_pad, S+1)

    kernel = functools.partial(_sampled_softmax_kernel,
                               temperature=temperature, l2_norm=l2_norm,
                               n_samples=n_samples)

    # TODO(synk): for large vocabularies (V*H_pad*2B >> VMEM) switch to a
    # scalar-prefetch DMA gather of only the (S+1)*tile sampled projection
    # rows per tile (manual double-buffer) instead of the resident-table matmul.
    # TODO(synk): the projection block index is constant; single-buffer it
    # (pl.Buffered(1) / persistent scratch) to halve its VMEM residency once
    # that path is validated across all target generations.
    out = pl.pallas_call(
        kernel,
        out_shape=jax.ShapeDtypeStruct((num_tiles, 2, 128), jnp.float32),
        grid_spec=pltpu.PrefetchScalarGridSpec(
            num_scalar_prefetch=0,
            grid=(num_tiles,),
            in_specs=[
                pl.BlockSpec((tile, H_pad), lambda i: (i, 0)),
                pl.BlockSpec((H_pad, V), lambda i: (0, 0)),      # broadcast table
                pl.BlockSpec((tile, n_samples + 1), lambda i: (i, 0)),
                pl.BlockSpec((tile, 1), lambda i: (i, 0)),
            ],
            out_specs=pl.BlockSpec((1, 2, 128), lambda i: (i, 0, 0)),
        ),
        compiler_params=pltpu.CompilerParams(
            dimension_semantics=("parallel",),
            vmem_limit_bytes=_default_vmem_limit_bytes()),
    )(x, proj_t, ids, w[:, None])

    loss_sum = jnp.sum(out[:, 0, 0])
    if weights is None:
        # F.cross_entropy(..., ignore_index, reduction='mean'):
        # sum over non-ignored rows / count of non-ignored rows.
        # NOTE: if every label is IGNORE_INDEX this is 0/0 -> NaN (as in torch).
        return loss_sum / jnp.sum(out[:, 1, 0])
    # Module semantics: (loss * w).sum() / (w.sum() + 1e-6); w.sum() is over
    # ALL rows (including ignored), exactly as in the PyTorch forward.
    return loss_sum / (w_total + 1e-6)


def _reference_loss(projection, inputs, labels, samples, weights=None, *,
                    temperature=1.0, l2_norm=True):
    """Pure-JAX f32 reference mirroring the PyTorch forward."""
    H = inputs.shape[-1]
    V = projection.shape[0]
    x = _l2_normalize(inputs.reshape(-1, H).astype(jnp.float32), l2_norm)
    lab = labels.reshape(-1).astype(jnp.int32)
    lab_c = jnp.clip(lab, 0, V - 1)
    proj = projection.astype(jnp.float32)
    label_scores = jnp.sum(x * _l2_normalize(proj[lab_c], l2_norm),
                           axis=-1, keepdims=True)
    noise = jnp.sum(_l2_normalize(proj[samples], l2_norm) * x[:, None, :], -1)
    noise = noise - 1.0e6 * (lab[:, None] == samples).astype(jnp.float32)
    scores = jnp.concatenate([label_scores, noise], axis=-1) / temperature
    lse = jax.scipy.special.logsumexp(scores, axis=-1)
    per_row = lse - scores[:, 0]
    valid = lab != IGNORE_INDEX
    masked = jnp.where(valid, per_row, 0.0)
    if weights is None:
        return jnp.sum(masked) / jnp.sum(valid)
    w = weights.reshape(-1).astype(jnp.float32)
    return jnp.sum(masked * w) / (jnp.sum(w) + 1e-6)


if __name__ == "__main__":
    B, L, H = 2, 8, 32           # N = 16 rows
    V = 128                      # vocab size (fits VMEM -> in-kernel MXU scoring)
    S = 16                       # n_samples (included_ids = [])
    temperature = 0.7
    l2_norm = True

    key = jax.random.PRNGKey(0)
    k_proj, k_x, k_lab, k_samp, k_w = jax.random.split(key, 5)

    projection = jax.random.normal(k_proj, (V, H), dtype=jnp.float32)
    inputs = jax.random.normal(k_x, (B, L, H), dtype=jnp.float32)
    labels = jax.random.randint(k_lab, (B, L), 0, V, dtype=jnp.int32)
    labels = labels.at[0, 3].set(IGNORE_INDEX)   # exercise ignore_index path

    # unweighted path
    loss = sampled_softmax_loss(projection, inputs, labels, weights=None,
                                n_samples=S, temperature=temperature,
                                l2_norm=l2_norm, sample_key=k_samp)
    loss = jax.block_until_ready(loss)

    # weighted path
    weights = jax.random.uniform(k_w, (B, L), dtype=jnp.float32)
    loss_w = sampled_softmax_loss(projection, inputs, labels, weights=weights,
                                  n_samples=S, temperature=temperature,
                                  l2_norm=l2_norm, sample_key=k_samp)
    loss_w = jax.block_until_ready(loss_w)

    # correctness checks against the pure-JAX f32 reference (same sampled ids);
    # tolerance is loosened because the kernel feeds the MXU in bf16
    # (accumulation stays f32, so the logsumexp itself is stable).
    N = B * L
    samples = jax.random.randint(k_samp, (N, S), 0, V, dtype=jnp.int32)
    ref = _reference_loss(projection, inputs, labels, samples, None,
                          temperature=temperature, l2_norm=l2_norm)
    ref_w = _reference_loss(projection, inputs, labels, samples, weights,
                            temperature=temperature, l2_norm=l2_norm)
    assert jnp.allclose(loss, ref, rtol=2e-2, atol=2e-2), (loss, ref)
    assert jnp.allclose(loss_w, ref_w, rtol=2e-2, atol=2e-2), (loss_w, ref_w)

    print("KERNEL_OK")
</pallas_src>

<mosaic_0001>
module attributes {stable_mosaic.version = 11 : i64} {
  func.func @_sampled_softmax_kernel(%arg0: i32, %arg1: memref<16x128xf32, #tpu.memory_space<vmem>>, %arg2: memref<128x128xbf16, #tpu.memory_space<vmem>>, %arg3: memref<16x17xi32, #tpu.memory_space<vmem>>, %arg4: memref<16x1xf32, #tpu.memory_space<vmem>>, %arg5: memref<1x2x128xf32, #tpu.memory_space<vmem>>) attributes {dimension_semantics = [#tpu.dimension_semantics<parallel>], iteration_bounds = array<i64: 1>, scalar_prefetch = 0 : i64, scratch_operands = 0 : i64, tpu.core_type = #tpu.core_type<tc>, window_params = [{transform_indices = @transform_0, window_bounds = array<i64: 16, 128>}, {pipeline_mode = #tpu.pipeline_mode<synchronous>, transform_indices = @transform_1, window_bounds = array<i64: 128, 128>}, {transform_indices = @transform_2, window_bounds = array<i64: 16, 17>}, {transform_indices = @transform_3, window_bounds = array<i64: 16, 1>}, {transform_indices = @transform_4, window_bounds = array<i64: 1, 2, 128>}]} {
    %c0 = arith.constant 0 : index
    %c0_0 = arith.constant 0 : index
    %0 = vector.load %arg1[%c0, %c0_0] : memref<16x128xf32, #tpu.memory_space<vmem>>, vector<16x128xf32>
    %1 = arith.mulf %0, %0 : vector<16x128xf32>
    %cst = arith.constant dense<0.000000e+00> : vector<16xf32>
    %2 = vector.multi_reduction <add>, %1, %cst [1] : vector<16x128xf32> to vector<16xf32>
    %3 = vector.shape_cast %2 : vector<16xf32> to vector<16x1xf32>
    %cst_1 = arith.constant 9.99999996E-13 : f32
    %4 = vector.broadcast %cst_1 : f32 to vector<16x1xf32>
    %5 = arith.maximumf %3, %4 : vector<16x1xf32>
    %6 = math.rsqrt %5 : vector<16x1xf32>
    %7 = vector.broadcast %6 : vector<16x1xf32> to vector<16x128xf32>
    %8 = arith.mulf %0, %7 : vector<16x128xf32>
    %9 = arith.truncf %8 : vector<16x128xf32> to vector<16x128xbf16>
    %c0_2 = arith.constant 0 : index
    %c0_3 = arith.constant 0 : index
    %10 = vector.load %arg2[%c0_2, %c0_3] : memref<128x128xbf16, #tpu.memory_space<vmem>>, vector<128x128xbf16>
    %cst_4 = arith.constant dense<0.000000e+00> : vector<16x128xf32>
    %11 = tpu.matmul %9, %10, %cst_4 {dimension_numbers = #tpu.dot_dimension_numbers<[1], [0], [0], [1], [0, 0, 1, 1], [], []>} : vector<16x128xbf16>, vector<128x128xbf16>, vector<16x128xf32> -> vector<16x128xf32>
    %c0_5 = arith.constant 0 : index
    %c0_6 = arith.constant 0 : index
    %12 = vector.load %arg3[%c0_5, %c0_6] : memref<16x17xi32, #tpu.memory_space<vmem>>, vector<16x17xi32>
    %13 = tpu.iota {dimensions = array<i32: 1>} : vector<16x128xi32>
    %14 = vector.extract_strided_slice %12 {offsets = [0, 0], sizes = [16, 1], strides = [1, 1]} : vector<16x17xi32> to vector<16x1xi32>
    %15 = vector.extract_strided_slice %12 {offsets = [0, 0], sizes = [16, 1], strides = [1, 1]} : vector<16x17xi32> to vector<16x1xi32>
    %16 = vector.broadcast %15 : vector<16x1xi32> to vector<16x128xi32>
    %17 = arith.cmpi eq, %13, %16 : vector<16x128xi32>
    %cst_7 = arith.constant 0.000000e+00 : f32
    %18 = vector.broadcast %cst_7 : f32 to vector<16x128xf32>
    %19 = arith.select %17, %11, %18 : vector<16x128xi1>, vector<16x128xf32>
    %cst_8 = arith.constant dense<0.000000e+00> : vector<16xf32>
    %20 = vector.multi_reduction <add>, %19, %cst_8 [1] : vector<16x128xf32> to vector<16xf32>
    %21 = vector.shape_cast %20 : vector<16xf32> to vector<16x1xf32>
    %cst_9 = arith.constant 1.42857146 : f32
    %22 = vector.broadcast %cst_9 : f32 to vector<16x1xf32>
    %23 = arith.mulf %21, %22 : vector<16x1xf32>
    %cst_10 = arith.constant 1.000000e+00 : f32
    %24 = vector.broadcast %cst_10 : f32 to vector<16x1xf32>
    %25 = vector.extract_strided_slice %12 {offsets = [0, 1], sizes = [16, 1], strides = [1, 1]} : vector<16x17xi32> to vector<16x1xi32>
    %26 = vector.broadcast %25 : vector<16x1xi32> to vector<16x128xi32>
    %27 = arith.cmpi eq, %13, %26 : vector<16x128xi32>
    %cst_11 = arith.constant 0.000000e+00 : f32
    %28 = vector.broadcast %cst_11 : f32 to vector<16x128xf32>
    %29 = arith.select %27, %11, %28 : vector<16x128xi1>, vector<16x128xf32>
    %cst_12 = arith.constant dense<0.000000e+00> : vector<16xf32>
    %30 = vector.multi_reduction <add>, %29, %cst_12 [1] : vector<16x128xf32> to vector<16xf32>
    %31 = vector.shape_cast %30 : vector<16xf32> to vector<16x1xf32>
    %32 = vector.extract_strided_slice %12 {offsets = [0, 1], sizes = [16, 1], strides = [1, 1]} : vector<16x17xi32> to vector<16x1xi32>
    %33 = arith.cmpi eq, %32, %14 : vector<16x1xi32>
    %34 = arith.extui %33 : vector<16x1xi1> to vector<16x1xi32>
    %35 = arith.sitofp %34 : vector<16x1xi32> to vector<16x1xf32>
    %cst_13 = arith.constant 1.000000e+06 : f32
    %36 = vector.broadcast %cst_13 : f32 to vector<16x1xf32>
    %37 = arith.mulf %36, %35 : vector<16x1xf32>
    %38 = arith.subf %31, %37 : vector<16x1xf32>
    %cst_14 = arith.constant 1.42857146 : f32
    %39 = vector.broadcast %cst_14 : f32 to vector<16x1xf32>
    %40 = arith.mulf %38, %39 : vector<16x1xf32>
    %41 = arith.maximumf %23, %40 : vector<16x1xf32>
    %42 = arith.subf %23, %41 : vector<16x1xf32>
    %43 = math.exp %42 : vector<16x1xf32>
    %44 = arith.mulf %24, %43 : vector<16x1xf32>
    %45 = arith.subf %40, %41 : vector<16x1xf32>
    %46 = math.exp %45 : vector<16x1xf32>
    %47 = arith.addf %44, %46 : vector<16x1xf32>
    %48 = vector.extract_strided_slice %12 {offsets = [0, 2], sizes = [16, 1], strides = [1, 1]} : vector<16x17xi32> to vector<16x1xi32>
    %49 = vector.broadcast %48 : vector<16x1xi32> to vector<16x128xi32>
    %50 = arith.cmpi eq, %13, %49 : vector<16x128xi32>
    %cst_15 = arith.constant 0.000000e+00 : f32
    %51 = vector.broadcast %cst_15 : f32 to vector<16x128xf32>
    %52 = arith.select %50, %11, %51 : vector<16x128xi1>, vector<16x128xf32>
    %cst_16 = arith.constant dense<0.000000e+00> : vector<16xf32>
    %53 = vector.multi_reduction <add>, %52, %cst_16 [1] : vector<16x128xf32> to vector<16xf32>
    %54 = vector.shape_cast %53 : vector<16xf32> to vector<16x1xf32>
    %55 = vector.extract_strided_slice %12 {offsets = [0, 2], sizes = [16, 1], strides = [1, 1]} : vector<16x17xi32> to vector<16x1xi32>
    %56 = arith.cmpi eq, %55, %14 : vector<16x1xi32>
    %57 = arith.extui %56 : vector<16x1xi1> to vector<16x1xi32>
    %58 = arith.sitofp %57 : vector<16x1xi32> to vector<16x1xf32>
    %cst_17 = arith.constant 1.000000e+06 : f32
    %59 = vector.broadcast %cst_17 : f32 to vector<16x1xf32>
    %60 = arith.mulf %59, %58 : vector<16x1xf32>
    %61 = arith.subf %54, %60 : vector<16x1xf32>
    %cst_18 = arith.constant 1.42857146 : f32
    %62 = vector.broadcast %cst_18 : f32 to vector<16x1xf32>
    %63 = arith.mulf %61, %62 : vector<16x1xf32>
    %64 = arith.maximumf %41, %63 : vector<16x1xf32>
    %65 = arith.subf %41, %64 : vector<16x1xf32>
    %66 = math.exp %65 : vector<16x1xf32>
    %67 = arith.mulf %47, %66 : vector<16x1xf32>
    %68 = arith.subf %63, %64 : vector<16x1xf32>
    %69 = math.exp %68 : vector<16x1xf32>
    %70 = arith.addf %67, %69 : vector<16x1xf32>
    %71 = vector.extract_strided_slice %12 {offsets = [0, 3], sizes = [16, 1], strides = [1, 1]} : vector<16x17xi32> to vector<16x1xi32>
    %72 = vector.broadcast %71 : vector<16x1xi32> to vector<16x128xi32>
    %73 = arith.cmpi eq, %13, %72 : vector<16x128xi32>
    %cst_19 = arith.constant 0.000000e+00 : f32
    %74 = vector.broadcast %cst_19 : f32 to vector<16x128xf32>
    %75 = arith.select %73, %11, %74 : vector<16x128xi1>, vector<16x128xf32>
    %cst_20 = arith.constant dense<0.000000e+00> : vector<16xf32>
    %76 = vector.multi_reduction <add>, %75, %cst_20 [1] : vector<16x128xf32> to vector<16xf32>
    %77 = vector.shape_cast %76 : vector<16xf32> to vector<16x1xf32>
    %78 = vector.extract_strided_slice %12 {offsets = [0, 3], sizes = [16, 1], strides = [1, 1]} : vector<16x17xi32> to vector<16x1xi32>
    %79 = arith.cmpi eq, %78, %14 : vector<16x1xi32>
    %80 = arith.extui %79 : vector<16x1xi1> to vector<16x1xi32>
    %81 = arith.sitofp %80 : vector<16x1xi32> to vector<16x1xf32>
    %cst_21 = arith.constant 1.000000e+06 : f32
    %82 = vector.broadcast %cst_21 : f32 to vector<16x1xf32>
    %83 = arith.mulf %82, %81 : vector<16x1xf32>
    %84 = arith.subf %77, %83 : vector<16x1xf32>
    %cst_22 = arith.constant 1.42857146 : f32
    %85 = vector.broadcast %cst_22 : f32 to vector<16x1xf32>
    %86 = arith.mulf %84, %85 : vector<16x1xf32>
    %87 = arith.maximumf %64, %86 : vector<16x1xf32>
    %88 = arith.subf %64, %87 : vector<16x1xf32>
    %89 = math.exp %88 : vector<16x1xf32>
    %90 = arith.mulf %70, %89 : vector<16x1xf32>
    %91 = arith.subf %86, %87 : vector<16x1xf32>
    %92 = math.exp %91 : vector<16x1xf32>
    %93 = arith.addf %90, %92 : vector<16x1xf32>
    %94 = vector.extract_strided_slice %12 {offsets = [0, 4], sizes = [16, 1], strides = [1, 1]} : vector<16x17xi32> to vector<16x1xi32>
    %95 = vector.broadcast %94 : vector<16x1xi32> to vector<16x128xi32>
    %96 = arith.cmpi eq, %13, %95 : vector<16x128xi32>
    %cst_23 = arith.constant 0.000000e+00 : f32
    %97 = vector.broadcast %cst_23 : f32 to vector<16x128xf32>
    %98 = arith.select %96, %11, %97 : vector<16x128xi1>, vector<16x128xf32>
    %cst_24 = arith.constant dense<0.000000e+00> : vector<16xf32>
    %99 = vector.multi_reduction <add>, %98, %cst_24 [1] : vector<16x128xf32> to vector<16xf32>
    %100 = vector.shape_cast %99 : vector<16xf32> to vector<16x1xf32>
    %101 = vector.extract_strided_slice %12 {offsets = [0, 4], sizes = [16, 1], strides = [1, 1]} : vector<16x17xi32> to vector<16x1xi32>
    %102 = arith.cmpi eq, %101, %14 : vector<16x1xi32>
    %103 = arith.extui %102 : vector<16x1xi1> to vector<16x1xi32>
    %104 = arith.sitofp %103 : vector<16x1xi32> to vector<16x1xf32>
    %cst_25 = arith.constant 1.000000e+06 : f32
    %105 = vector.broadcast %cst_25 : f32 to vector<16x1xf32>
    %106 = arith.mulf %105, %104 : vector<16x1xf32>
    %107 = arith.subf %100, %106 : vector<16x1xf32>
    %cst_26 = arith.constant 1.42857146 : f32
    %108 = vector.broadcast %cst_26 : f32 to vector<16x1xf32>
    %109 = arith.mulf %107, %108 : vector<16x1xf32>
    %110 = arith.maximumf %87, %109 : vector<16x1xf32>
    %111 = arith.subf %87, %110 : vector<16x1xf32>
    %112 = math.exp %111 : vector<16x1xf32>
    %113 = arith.mulf %93, %112 : vector<16x1xf32>
    %114 = arith.subf %109, %110 : vector<16x1xf32>
    %115 = math.exp %114 : vector<16x1xf32>
    %116 = arith.addf %113, %115 : vector<16x1xf32>
    %117 = vector.extract_strided_slice %12 {offsets = [0, 5], sizes = [16, 1], strides = [1, 1]} : vector<16x17xi32> to vector<16x1xi32>
    %118 = vector.broadcast %117 : vector<16x1xi32> to vector<16x128xi32>
    %119 = arith.cmpi eq, %13, %118 : vector<16x128xi32>
    %cst_27 = arith.constant 0.000000e+00 : f32
    %120 = vector.broadcast %cst_27 : f32 to vector<16x128xf32>
    %121 = arith.select %119, %11, %120 : vector<16x128xi1>, vector<16x128xf32>
    %cst_28 = arith.constant dense<0.000000e+00> : vector<16xf32>
    %122 = vector.multi_reduction <add>, %121, %cst_28 [1] : vector<16x128xf32> to vector<16xf32>
    %123 = vector.shape_cast %122 : vector<16xf32> to vector<16x1xf32>
    %124 = vector.extract_strided_slice %12 {offsets = [0, 5], sizes = [16, 1], strides = [1, 1]} : vector<16x17xi32> to vector<16x1xi32>
    %125 = arith.cmpi eq, %124, %14 : vector<16x1xi32>
    %126 = arith.extui %125 : vector<16x1xi1> to vector<16x1xi32>
    %127 = arith.sitofp %126 : vector<16x1xi32> to vector<16x1xf32>
    %cst_29 = arith.constant 1.000000e+06 : f32
    %128 = vector.broadcast %cst_29 : f32 to vector<16x1xf32>
    %129 = arith.mulf %128, %127 : vector<16x1xf32>
    %130 = arith.subf %123, %129 : vector<16x1xf32>
    %cst_30 = arith.constant 1.42857146 : f32
    %131 = vector.broadcast %cst_30 : f32 to vector<16x1xf32>
    %132 = arith.mulf %130, %131 : vector<16x1xf32>
    %133 = arith.maximumf %110, %132 : vector<16x1xf32>
    %134 = arith.subf %110, %133 : vector<16x1xf32>
    %135 = math.exp %134 : vector<16x1xf32>
    %136 = arith.mulf %116, %135 : vector<16x1xf32>
    %137 = arith.subf %132, %133 : vector<16x1xf32>
    %138 = math.exp %137 : vector<16x1xf32>
    %139 = arith.addf %136, %138 : vector<16x1xf32>
    %140 = vector.extract_strided_slice %12 {offsets = [0, 6], sizes = [16, 1], strides = [1, 1]} : vector<16x17xi32> to vector<16x1xi32>
    %141 = vector.broadcast %140 : vector<16x1xi32> to vector<16x128xi32>
    %142 = arith.cmpi eq, %13, %141 : vector<16x128xi32>
    %cst_31 = arith.constant 0.000000e+00 : f32
    %143 = vector.broadcast %cst_31 : f32 to vector<16x128xf32>
    %144 = arith.select %142, %11, %143 : vector<16x128xi1>, vector<16x128xf32>
    %cst_32 = arith.constant dense<0.000000e+00> : vector<16xf32>
    %145 = vector.multi_reduction <add>, %144, %cst_32 [1] : vector<16x128xf32> to vector<16xf32>
    %146 = vector.shape_cast %145 : vector<16xf32> to vector<16x1xf32>
    %147 = vector.extract_strided_slice %12 {offsets = [0, 6], sizes = [16, 1], strides = [1, 1]} : vector<16x17xi32> to vector<16x1xi32>
    %148 = arith.cmpi eq, %147, %14 : vector<16x1xi32>
    %149 = arith.extui %148 : vector<16x1xi1> to vector<16x1xi32>
    %150 = arith.sitofp %149 : vector<16x1xi32> to vector<16x1xf32>
    %cst_33 = arith.constant 1.000000e+06 : f32
    %151 = vector.broadcast %cst_33 : f32 to vector<16x1xf32>
    %152 = arith.mulf %151, %150 : vector<16x1xf32>
    %153 = arith.subf %146, %152 : vector<16x1xf32>
    %cst_34 = arith.constant 1.42857146 : f32
    %154 = vector.broadcast %cst_34 : f32 to vector<16x1xf32>
    %155 = arith.mulf %153, %154 : vector<16x1xf32>
    %156 = arith.maximumf %133, %155 : vector<16x1xf32>
    %157 = arith.subf %133, %156 : vector<16x1xf32>
    %158 = math.exp %157 : vector<16x1xf32>
    %159 = arith.mulf %139, %158 : vector<16x1xf32>
    %160 = arith.subf %155, %156 : vector<16x1xf32>
    %161 = math.exp %160 : vector<16x1xf32>
    %162 = arith.addf %159, %161 : vector<16x1xf32>
    %163 = vector.extract_strided_slice %12 {offsets = [0, 7], sizes = [16, 1], strides = [1, 1]} : vector<16x17xi32> to vector<16x1xi32>
    %164 = vector.broadcast %163 : vector<16x1xi32> to vector<16x128xi32>
    %165 = arith.cmpi eq, %13, %164 : vector<16x128xi32>
    %cst_35 = arith.constant 0.000000e+00 : f32
    %166 = vector.broadcast %cst_35 : f32 to vector<16x128xf32>
    %167 = arith.select %165, %11, %166 : vector<16x128xi1>, vector<16x128xf32>
    %cst_36 = arith.constant dense<0.000000e+00> : vector<16xf32>
    %168 = vector.multi_reduction <add>, %167, %cst_36 [1] : vector<16x128xf32> to vector<16xf32>
    %169 = vector.shape_cast %168 : vector<16xf32> to vector<16x1xf32>
    %170 = vector.extract_strided_slice %12 {offsets = [0, 7], sizes = [16, 1], strides = [1, 1]} : vector<16x17xi32> to vector<16x1xi32>
    %171 = arith.cmpi eq, %170, %14 : vector<16x1xi32>
    %172 = arith.extui %171 : vector<16x1xi1> to vector<16x1xi32>
    %173 = arith.sitofp %172 : vector<16x1xi32> to vector<16x1xf32>
    %cst_37 = arith.constant 1.000000e+06 : f32
    %174 = vector.broadcast %cst_37 : f32 to vector<16x1xf32>
    %175 = arith.mulf %174, %173 : vector<16x1xf32>
    %176 = arith.subf %169, %175 : vector<16x1xf32>
    %cst_38 = arith.constant 1.42857146 : f32
    %177 = vector.broadcast %cst_38 : f32 to vector<16x1xf32>
    %178 = arith.mulf %176, %177 : vector<16x1xf32>
    %179 = arith.maximumf %156, %178 : vector<16x1xf32>
    %180 = arith.subf %156, %179 : vector<16x1xf32>
    %181 = math.exp %180 : vector<16x1xf32>
    %182 = arith.mulf %162, %181 : vector<16x1xf32>
    %183 = arith.subf %178, %179 : vector<16x1xf32>
    %184 = math.exp %183 : vector<16x1xf32>
    %185 = arith.addf %182, %184 : vector<16x1xf32>
    %186 = vector.extract_strided_slice %12 {offsets = [0, 8], sizes = [16, 1], strides = [1, 1]} : vector<16x17xi32> to vector<16x1xi32>
    %187 = vector.broadcast %186 : vector<16x1xi32> to vector<16x128xi32>
    %188 = arith.cmpi eq, %13, %187 : vector<16x128xi32>
    %cst_39 = arith.constant 0.000000e+00 : f32
    %189 = vector.broadcast %cst_39 : f32 to vector<16x128xf32>
    %190 = arith.select %188, %11, %189 : vector<16x128xi1>, vector<16x128xf32>
    %cst_40 = arith.constant dense<0.000000e+00> : vector<16xf32>
    %191 = vector.multi_reduction <add>, %190, %cst_40 [1] : vector<16x128xf32> to vector<16xf32>
    %192 = vector.shape_cast %191 : vector<16xf32> to vector<16x1xf32>
    %193 = vector.extract_strided_slice %12 {offsets = [0, 8], sizes = [16, 1], strides = [1, 1]} : vector<16x17xi32> to vector<16x1xi32>
    %194 = arith.cmpi eq, %193, %14 : vector<16x1xi32>
    %195 = arith.extui %194 : vector<16x1xi1> to vector<16x1xi32>
    %196 = arith.sitofp %195 : vector<16x1xi32> to vector<16x1xf32>
    %cst_41 = arith.constant 1.000000e+06 : f32
    %197 = vector.broadcast %cst_41 : f32 to vector<16x1xf32>
    %198 = arith.mulf %197, %196 : vector<16x1xf32>
    %199 = arith.subf %192, %198 : vector<16x1xf32>
    %cst_42 = arith.constant 1.42857146 : f32
    %200 = vector.broadcast %cst_42 : f32 to vector<16x1xf32>
    %201 = arith.mulf %199, %200 : vector<16x1xf32>
    %202 = arith.maximumf %179, %201 : vector<16x1xf32>
    %203 = arith.subf %179, %202 : vector<16x1xf32>
    %204 = math.exp %203 : vector<16x1xf32>
    %205 = arith.mulf %185, %204 : vector<16x1xf32>
    %206 = arith.subf %201, %202 : vector<16x1xf32>
    %207 = math.exp %206 : vector<16x1xf32>
    %208 = arith.addf %205, %207 : vector<16x1xf32>
    %209 = vector.extract_strided_slice %12 {offsets = [0, 9], sizes = [16, 1], strides = [1, 1]} : vector<16x17xi32> to vector<16x1xi32>
    %210 = vector.broadcast %209 : vector<16x1xi32> to vector<16x128xi32>
    %211 = arith.cmpi eq, %13, %210 : vector<16x128xi32>
    %cst_43 = arith.constant 0.000000e+00 : f32
    %212 = vector.broadcast %cst_43 : f32 to vector<16x128xf32>
    %213 = arith.select %211, %11, %212 : vector<16x128xi1>, vector<16x128xf32>
    %cst_44 = arith.constant dense<0.000000e+00> : vector<16xf32>
    %214 = vector.multi_reduction <add>, %213, %cst_44 [1] : vector<16x128xf32> to vector<16xf32>
    %215 = vector.shape_cast %214 : vector<16xf32> to vector<16x1xf32>
    %216 = vector.extract_strided_slice %12 {offsets = [0, 9], sizes = [16, 1], strides = [1, 1]} : vector<16x17xi32> to vector<16x1xi32>
    %217 = arith.cmpi eq, %216, %14 : vector<16x1xi32>
    %218 = arith.extui %217 : vector<16x1xi1> to vector<16x1xi32>
    %219 = arith.sitofp %218 : vector<16x1xi32> to vector<16x1xf32>
    %cst_45 = arith.constant 1.000000e+06 : f32
    %220 = vector.broadcast %cst_45 : f32 to vector<16x1xf32>
    %221 = arith.mulf %220, %219 : vector<16x1xf32>
    %222 = arith.subf %215, %221 : vector<16x1xf32>
    %cst_46 = arith.constant 1.42857146 : f32
    %223 = vector.broadcast %cst_46 : f32 to vector<16x1xf32>
    %224 = arith.mulf %222, %223 : vector<16x1xf32>
    %225 = arith.maximumf %202, %224 : vector<16x1xf32>
    %226 = arith.subf %202, %225 : vector<16x1xf32>
    %227 = math.exp %226 : vector<16x1xf32>
    %228 = arith.mulf %208, %227 : vector<16x1xf32>
    %229 = arith.subf %224, %225 : vector<16x1xf32>
    %230 = math.exp %229 : vector<16x1xf32>
    %231 = arith.addf %228, %230 : vector<16x1xf32>
    %232 = vector.extract_strided_slice %12 {offsets = [0, 10], sizes = [16, 1], strides = [1, 1]} : vector<16x17xi32> to vector<16x1xi32>
    %233 = vector.broadcast %232 : vector<16x1xi32> to vector<16x128xi32>
    %234 = arith.cmpi eq, %13, %233 : vector<16x128xi32>
    %cst_47 = arith.constant 0.000000e+00 : f32
    %235 = vector.broadcast %cst_47 : f32 to vector<16x128xf32>
    %236 = arith.select %234, %11, %235 : vector<16x128xi1>, vector<16x128xf32>
    %cst_48 = arith.constant dense<0.000000e+00> : vector<16xf32>
    %237 = vector.multi_reduction <add>, %236, %cst_48 [1] : vector<16x128xf32> to vector<16xf32>
    %238 = vector.shape_cast %237 : vector<16xf32> to vector<16x1xf32>
    %239 = vector.extract_strided_slice %12 {offsets = [0, 10], sizes = [16, 1], strides = [1, 1]} : vector<16x17xi32> to vector<16x1xi32>
    %240 = arith.cmpi eq, %239, %14 : vector<16x1xi32>
    %241 = arith.extui %240 : vector<16x1xi1> to vector<16x1xi32>
    %242 = arith.sitofp %241 : vector<16x1xi32> to vector<16x1xf32>
    %cst_49 = arith.constant 1.000000e+06 : f32
    %243 = vector.broadcast %cst_49 : f32 to vector<16x1xf32>
    %244 = arith.mulf %243, %242 : vector<16x1xf32>
    %245 = arith.subf %238, %244 : vector<16x1xf32>
    %cst_50 = arith.constant 1.42857146 : f32
    %246 = vector.broadcast %cst_50 : f32 to vector<16x1xf32>
    %247 = arith.mulf %245, %246 : vector<16x1xf32>
    %248 = arith.maximumf %225, %247 : vector<16x1xf32>
    %249 = arith.subf %225, %248 : vector<16x1xf32>
    %250 = math.exp %249 : vector<16x1xf32>
    %251 = arith.mulf %231, %250 : vector<16x1xf32>
    %252 = arith.subf %247, %248 : vector<16x1xf32>
    %253 = math.exp %252 : vector<16x1xf32>
    %254 = arith.addf %251, %253 : vector<16x1xf32>
    %255 = vector.extract_strided_slice %12 {offsets = [0, 11], sizes = [16, 1], strides = [1, 1]} : vector<16x17xi32> to vector<16x1xi32>
    %256 = vector.broadcast %255 : vector<16x1xi32> to vector<16x128xi32>
    %257 = arith.cmpi eq, %13, %256 : vector<16x128xi32>
    %cst_51 = arith.constant 0.000000e+00 : f32
    %258 = vector.broadcast %cst_51 : f32 to vector<16x128xf32>
    %259 = arith.select %257, %11, %258 : vector<16x128xi1>, vector<16x128xf32>
    %cst_52 = arith.constant dense<0.000000e+00> : vector<16xf32>
    %260 = vector.multi_reduction <add>, %259, %cst_52 [1] : vector<16x128xf32> to vector<16xf32>
    %261 = vector.shape_cast %260 : vector<16xf32> to vector<16x1xf32>
    %262 = vector.extract_strided_slice %12 {offsets = [0, 11], sizes = [16, 1], strides = [1, 1]} : vector<16x17xi32> to vector<16x1xi32>
    %263 = arith.cmpi eq, %262, %14 : vector<16x1xi32>
    %264 = arith.extui %263 : vector<16x1xi1> to vector<16x1xi32>
    %265 = arith.sitofp %264 : vector<16x1xi32> to vector<16x1xf32>
    %cst_53 = arith.constant 1.000000e+06 : f32
    %266 = vector.broadcast %cst_53 : f32 to vector<16x1xf32>
    %267 = arith.mulf %266, %265 : vector<16x1xf32>
    %268 = arith.subf %261, %267 : vector<16x1xf32>
    %cst_54 = arith.constant 1.42857146 : f32
    %269 = vector.broadcast %cst_54 : f32 to vector<16x1xf32>
    %270 = arith.mulf %268, %269 : vector<16x1xf32>
    %271 = arith.maximumf %248, %270 : vector<16x1xf32>
    %272 = arith.subf %248, %271 : vector<16x1xf32>
    %273 = math.exp %272 : vector<16x1xf32>
    %274 = arith.mulf %254, %273 : vector<16x1xf32>
    %275 = arith.subf %270, %271 : vector<16x1xf32>
    %276 = math.exp %275 : vector<16x1xf32>
    %277 = arith.addf %274, %276 : vector<16x1xf32>
    %278 = vector.extract_strided_slice %12 {offsets = [0, 12], sizes = [16, 1], strides = [1, 1]} : vector<16x17xi32> to vector<16x1xi32>
    %279 = vector.broadcast %278 : vector<16x1xi32> to vector<16x128xi32>
    %280 = arith.cmpi eq, %13, %279 : vector<16x128xi32>
    %cst_55 = arith.constant 0.000000e+00 : f32
    %281 = vector.broadcast %cst_55 : f32 to vector<16x128xf32>
    %282 = arith.select %280, %11, %281 : vector<16x128xi1>, vector<16x128xf32>
    %cst_56 = arith.constant dense<0.000000e+00> : vector<16xf32>
    %283 = vector.multi_reduction <add>, %282, %cst_56 [1] : vector<16x128xf32> to vector<16xf32>
    %284 = vector.shape_cast %283 : vector<16xf32> to vector<16x1xf32>
    %285 = vector.extract_strided_slice %12 {offsets = [0, 12], sizes = [16, 1], strides = [1, 1]} : vector<16x17xi32> to vector<16x1xi32>
    %286 = arith.cmpi eq, %285, %14 : vector<16x1xi32>
    %287 = arith.extui %286 : vector<16x1xi1> to vector<16x1xi32>
    %288 = arith.sitofp %287 : vector<16x1xi32> to vector<16x1xf32>
    %cst_57 = arith.constant 1.000000e+06 : f32
    %289 = vector.broadcast %cst_57 : f32 to vector<16x1xf32>
    %290 = arith.mulf %289, %288 : vector<16x1xf32>
    %291 = arith.subf %284, %290 : vector<16x1xf32>
    %cst_58 = arith.constant 1.42857146 : f32
    %292 = vector.broadcast %cst_58 : f32 to vector<16x1xf32>
    %293 = arith.mulf %291, %292 : vector<16x1xf32>
    %294 = arith.maximumf %271, %293 : vector<16x1xf32>
    %295 = arith.subf %271, %294 : vector<16x1xf32>
    %296 = math.exp %295 : vector<16x1xf32>
    %297 = arith.mulf %277, %296 : vector<16x1xf32>
    %298 = arith.subf %293, %294 : vector<16x1xf32>
    %299 = math.exp %298 : vector<16x1xf32>
    %300 = arith.addf %297, %299 : vector<16x1xf32>
    %301 = vector.extract_strided_slice %12 {offsets = [0, 13], sizes = [16, 1], strides = [1, 1]} : vector<16x17xi32> to vector<16x1xi32>
    %302 = vector.broadcast %301 : vector<16x1xi32> to vector<16x128xi32>
    %303 = arith.cmpi eq, %13, %302 : vector<16x128xi32>
    %cst_59 = arith.constant 0.000000e+00 : f32
    %304 = vector.broadcast %cst_59 : f32 to vector<16x128xf32>
    %305 = arith.select %303, %11, %304 : vector<16x128xi1>, vector<16x128xf32>
    %cst_60 = arith.constant dense<0.000000e+00> : vector<16xf32>
    %306 = vector.multi_reduction <add>, %305, %cst_60 [1] : vector<16x128xf32> to vector<16xf32>
    %307 = vector.shape_cast %306 : vector<16xf32> to vector<16x1xf32>
    %308 = vector.extract_strided_slice %12 {offsets = [0, 13], sizes = [16, 1], strides = [1, 1]} : vector<16x17xi32> to vector<16x1xi32>
    %309 = arith.cmpi eq, %308, %14 : vector<16x1xi32>
    %310 = arith.extui %309 : vector<16x1xi1> to vector<16x1xi32>
    %311 = arith.sitofp %310 : vector<16x1xi32> to vector<16x1xf32>
    %cst_61 = arith.constant 1.000000e+06 : f32
    %312 = vector.broadcast %cst_61 : f32 to vector<16x1xf32>
    %313 = arith.mulf %312, %311 : vector<16x1xf32>
    %314 = arith.subf %307, %313 : vector<16x1xf32>
    %cst_62 = arith.constant 1.42857146 : f32
    %315 = vector.broadcast %cst_62 : f32 to vector<16x1xf32>
    %316 = arith.mulf %314, %315 : vector<16x1xf32>
    %317 = arith.maximumf %294, %316 : vector<16x1xf32>
    %318 = arith.subf %294, %317 : vector<16x1xf32>
    %319 = math.exp %318 : vector<16x1xf32>
    %320 = arith.mulf %300, %319 : vector<16x1xf32>
    %321 = arith.subf %316, %317 : vector<16x1xf32>
    %322 = math.exp %321 : vector<16x1xf32>
    %323 = arith.addf %320, %322 : vector<16x1xf32>
    %324 = vector.extract_strided_slice %12 {offsets = [0, 14], sizes = [16, 1], strides = [1, 1]} : vector<16x17xi32> to vector<16x1xi32>
    %325 = vector.broadcast %324 : vector<16x1xi32> to vector<16x128xi32>
    %326 = arith.cmpi eq, %13, %325 : vector<16x128xi32>
    %cst_63 = arith.constant 0.000000e+00 : f32
    %327 = vector.broadcast %cst_63 : f32 to vector<16x128xf32>
    %328 = arith.select %326, %11, %327 : vector<16x128xi1>, vector<16x128xf32>
    %cst_64 = arith.constant dense<0.000000e+00> : vector<16xf32>
    %329 = vector.multi_reduction <add>, %328, %cst_64 [1] : vector<16x128xf32> to vector<16xf32>
    %330 = vector.shape_cast %329 : vector<16xf32> to vector<16x1xf32>
    %331 = vector.extract_strided_slice %12 {offsets = [0, 14], sizes = [16, 1], strides = [1, 1]} : vector<16x17xi32> to vector<16x1xi32>
    %332 = arith.cmpi eq, %331, %14 : vector<16x1xi32>
    %333 = arith.extui %332 : vector<16x1xi1> to vector<16x1xi32>
    %334 = arith.sitofp %333 : vector<16x1xi32> to vector<16x1xf32>
    %cst_65 = arith.constant 1.000000e+06 : f32
    %335 = vector.broadcast %cst_65 : f32 to vector<16x1xf32>
    %336 = arith.mulf %335, %334 : vector<16x1xf32>
    %337 = arith.subf %330, %336 : vector<16x1xf32>
    %cst_66 = arith.constant 1.42857146 : f32
    %338 = vector.broadcast %cst_66 : f32 to vector<16x1xf32>
    %339 = arith.mulf %337, %338 : vector<16x1xf32>
    %340 = arith.maximumf %317, %339 : vector<16x1xf32>
    %341 = arith.subf %317, %340 : vector<16x1xf32>
    %342 = math.exp %341 : vector<16x1xf32>
    %343 = arith.mulf %323, %342 : vector<16x1xf32>
    %344 = arith.subf %339, %340 : vector<16x1xf32>
    %345 = math.exp %344 : vector<16x1xf32>
    %346 = arith.addf %343, %345 : vector<16x1xf32>
    %347 = vector.extract_strided_slice %12 {offsets = [0, 15], sizes = [16, 1], strides = [1, 1]} : vector<16x17xi32> to vector<16x1xi32>
    %348 = vector.broadcast %347 : vector<16x1xi32> to vector<16x128xi32>
    %349 = arith.cmpi eq, %13, %348 : vector<16x128xi32>
    %cst_67 = arith.constant 0.000000e+00 : f32
    %350 = vector.broadcast %cst_67 : f32 to vector<16x128xf32>
    %351 = arith.select %349, %11, %350 : vector<16x128xi1>, vector<16x128xf32>
    %cst_68 = arith.constant dense<0.000000e+00> : vector<16xf32>
    %352 = vector.multi_reduction <add>, %351, %cst_68 [1] : vector<16x128xf32> to vector<16xf32>
    %353 = vector.shape_cast %352 : vector<16xf32> to vector<16x1xf32>
    %354 = vector.extract_strided_slice %12 {offsets = [0, 15], sizes = [16, 1], strides = [1, 1]} : vector<16x17xi32> to vector<16x1xi32>
    %355 = arith.cmpi eq, %354, %14 : vector<16x1xi32>
    %356 = arith.extui %355 : vector<16x1xi1> to vector<16x1xi32>
    %357 = arith.sitofp %356 : vector<16x1xi32> to vector<16x1xf32>
    %cst_69 = arith.constant 1.000000e+06 : f32
    %358 = vector.broadcast %cst_69 : f32 to vector<16x1xf32>
    %359 = arith.mulf %358, %357 : vector<16x1xf32>
    %360 = arith.subf %353, %359 : vector<16x1xf32>
    %cst_70 = arith.constant 1.42857146 : f32
    %361 = vector.broadcast %cst_70 : f32 to vector<16x1xf32>
    %362 = arith.mulf %360, %361 : vector<16x1xf32>
    %363 = arith.maximumf %340, %362 : vector<16x1xf32>
    %364 = arith.subf %340, %363 : vector<16x1xf32>
    %365 = math.exp %364 : vector<16x1xf32>
    %366 = arith.mulf %346, %365 : vector<16x1xf32>
    %367 = arith.subf %362, %363 : vector<16x1xf32>
    %368 = math.exp %367 : vector<16x1xf32>
    %369 = arith.addf %366, %368 : vector<16x1xf32>
    %370 = vector.extract_strided_slice %12 {offsets = [0, 16], sizes = [16, 1], strides = [1, 1]} : vector<16x17xi32> to vector<16x1xi32>
    %371 = vector.broadcast %370 : vector<16x1xi32> to vector<16x128xi32>
    %372 = arith.cmpi eq, %13, %371 : vector<16x128xi32>
    %cst_71 = arith.constant 0.000000e+00 : f32
    %373 = vector.broadcast %cst_71 : f32 to vector<16x128xf32>
    %374 = arith.select %372, %11, %373 : vector<16x128xi1>, vector<16x128xf32>
    %cst_72 = arith.constant dense<0.000000e+00> : vector<16xf32>
    %375 = vector.multi_reduction <add>, %374, %cst_72 [1] : vector<16x128xf32> to vector<16xf32>
    %376 = vector.shape_cast %375 : vector<16xf32> to vector<16x1xf32>
    %377 = vector.extract_strided_slice %12 {offsets = [0, 16], sizes = [16, 1], strides = [1, 1]} : vector<16x17xi32> to vector<16x1xi32>
    %378 = arith.cmpi eq, %377, %14 : vector<16x1xi32>
    %379 = arith.extui %378 : vector<16x1xi1> to vector<16x1xi32>
    %380 = arith.sitofp %379 : vector<16x1xi32> to vector<16x1xf32>
    %cst_73 = arith.constant 1.000000e+06 : f32
    %381 = vector.broadcast %cst_73 : f32 to vector<16x1xf32>
    %382 = arith.mulf %381, %380 : vector<16x1xf32>
    %383 = arith.subf %376, %382 : vector<16x1xf32>
    %cst_74 = arith.constant 1.42857146 : f32
    %384 = vector.broadcast %cst_74 : f32 to vector<16x1xf32>
    %385 = arith.mulf %383, %384 : vector<16x1xf32>
    %386 = arith.maximumf %363, %385 : vector<16x1xf32>
    %387 = arith.subf %363, %386 : vector<16x1xf32>
    %388 = math.exp %387 : vector<16x1xf32>
    %389 = arith.mulf %369, %388 : vector<16x1xf32>
    %390 = arith.subf %385, %386 : vector<16x1xf32>
    %391 = math.exp %390 : vector<16x1xf32>
    %392 = arith.addf %389, %391 : vector<16x1xf32>
    %393 = math.log %392 : vector<16x1xf32>
    %394 = arith.addf %386, %393 : vector<16x1xf32>
    %395 = arith.subf %394, %23 : vector<16x1xf32>
    %c-100_i32 = arith.constant -100 : i32
    %396 = vector.broadcast %c-100_i32 : i32 to vector<16x1xi32>
    %397 = arith.cmpi ne, %14, %396 : vector<16x1xi32>
    %398 = arith.extui %397 : vector<16x1xi1> to vector<16x1xi32>
    %399 = arith.sitofp %398 : vector<16x1xi32> to vector<16x1xf32>
    %c0_75 = arith.constant 0 : index
    %c0_76 = arith.constant 0 : index
    %400 = vector.load %arg4[%c0_75, %c0_76] : memref<16x1xf32, #tpu.memory_space<vmem>>, vector<16x1xf32>
    %401 = arith.mulf %395, %399 : vector<16x1xf32>
    %402 = arith.mulf %401, %400 : vector<16x1xf32>
    %403 = vector.shape_cast %402 : vector<16x1xf32> to vector<1x16x1xf32>
    %cst_77 = arith.constant dense<0.000000e+00> : vector<1xf32>
    %404 = vector.multi_reduction <add>, %403, %cst_77 [1, 2] : vector<1x16x1xf32> to vector<1xf32>
    %405 = vector.shape_cast %404 : vector<1xf32> to vector<1x1x1xf32>
    %406 = vector.extract %405[0, 0, 0] : f32 from vector<1x1x1xf32>
    %407 = vector.shape_cast %399 : vector<16x1xf32> to vector<1x16x1xf32>
    %cst_78 = arith.constant dense<0.000000e+00> : vector<1xf32>
    %408 = vector.multi_reduction <add>, %407, %cst_78 [1, 2] : vector<1x16x1xf32> to vector<1xf32>
    %409 = vector.shape_cast %408 : vector<1xf32> to vector<1x1x1xf32>
    %410 = vector.extract %409[0, 0, 0] : f32 from vector<1x1x1xf32>
    %411 = tpu.iota {dimensions = array<i32: 1>} : vector<1x2x128xi32>
    %c0_i32 = arith.constant 0 : i32
    %412 = vector.broadcast %c0_i32 : i32 to vector<1x2x128xi32>
    %413 = arith.cmpi eq, %411, %412 : vector<1x2x128xi32>
    %414 = vector.broadcast %406 : f32 to vector<1x2x128xf32>
    %415 = vector.broadcast %410 : f32 to vector<1x2x128xf32>
    %416 = arith.select %413, %414, %415 : vector<1x2x128xi1>, vector<1x2x128xf32>
    %c0_79 = arith.constant 0 : index
    %c0_80 = arith.constant 0 : index
    %c0_81 = arith.constant 0 : index
    %417 = vector.load %arg5[%c0_79, %c0_80, %c0_81] : memref<1x2x128xf32, #tpu.memory_space<vmem>>, vector<1x2x128xf32>
    tpu.vector_store %arg5[%c0_79, %c0_80, %c0_81], %416 {strides = array<i32>} : memref<1x2x128xf32, #tpu.memory_space<vmem>>, vector<1x2x128xf32>,
    return
  }
  func.func @transform_0(%arg0: i32) -> (i32, i32) {
    %c0_i32 = arith.constant 0 : i32
    %c0_i32_0 = arith.constant 0 : i32
    return %arg0, %c0_i32 : i32, i32
  }
  func.func @transform_1(%arg0: i32) -> (i32, i32) {
    %c0_i32 = arith.constant 0 : i32
    %c0_i32_0 = arith.constant 0 : i32
    %c0_i32_1 = arith.constant 0 : i32
    return %c0_i32, %c0_i32_0 : i32, i32
  }
  func.func @transform_2(%arg0: i32) -> (i32, i32) {
    %c0_i32 = arith.constant 0 : i32
    %c0_i32_0 = arith.constant 0 : i32
    return %arg0, %c0_i32 : i32, i32
  }
  func.func @transform_3(%arg0: i32) -> (i32, i32) {
    %c0_i32 = arith.constant 0 : i32
    %c0_i32_0 = arith.constant 0 : i32
    return %arg0, %c0_i32 : i32, i32
  }
  func.func @transform_4(%arg0: i32) -> (i32, i32, i32) {
    %c0_i32 = arith.constant 0 : i32
    %c0_i32_0 = arith.constant 0 : i32
    %c0_i32_1 = arith.constant 0 : i32
    return %arg0, %c0_i32, %c0_i32_0 : i32, i32, i32
  }
}

</mosaic_0001>

<bundles_post_ra>
// kernel: tpu_custom_call.1
= control target key start
LH: loop header
LB: loop body
LE: loop exit
PB: predicated region body
PF: predicated region fallthrough
CT: control target
= control target key end

     0   :  { %9 = vsyncpa [#allocation3], 0  ;;  %s2776_s0 = inlined_call_operand.vmem [shape: f32[16,128], index: 0, kind: input, shape index: {}]   ;;  %s2777_s1 = inlined_call_operand.hbm [shape: bf16[128,128], index: 1, kind: input, shape index: {}]   ;;  %s2778_s2 = inlined_call_operand.hbm [shape: s32[16,17], index: 2, kind: input, shape index: {}]   ;;  %s2779_s3 = inlined_call_operand.vmem [shape: f32[16,1], index: 3, kind: input, shape index: {}]   ;;  %s2780_s4 = inlined_call_operand.hbm [shape: f32[1,2,128], index: 4, kind: output, shape index: {}]  }
   0x1   :  { %10 = vsyncpa [#allocation6], 0 }
   0x2   :  { %11 = vsyncpa [#allocation4], 0  ;;  %s18_s17 = sshll.u32 %s2777_s1, 4  ;;  %s1783_s18 = smov [#allocation2]   ;;  %s19_s17 = int_to_ptr.hbm [resolvable:$true] %s18_s17 }
   0x3   :  { %s20_s19 = sshll.u32 %s1783_s18, 4  ;;  %s31_s22 = sshll.u32 %s2778_s2, 4  ;;  %s21_s19 = int_to_ptr.vmem [resolvable:$true] %s20_s19  ;;  %s32_s22 = int_to_ptr.hbm [resolvable:$true] %s31_s22 }
   0x4   :  { %s1784_s23 = smov 64   ;;  %s1785_s24 = smov 4  }
   0x5   :  { %26 = dma.hbm_to_vmem [thread:$0]  %s19_s17, 1024, %s21_s19, [#allocation3], %s1784_s23, %s1784_s23, %s1785_s24  }
   0x6   :  { %s1786_s25 = smov [#allocation5]   ;;  %s1787_s27 = smov 128  }
   0x7   :  { %s33_s26 = sshll.u32 %s1786_s25, 4  ;;  %s1788_s28 = smov 8   ;;  %s34_s26 = int_to_ptr.vmem [resolvable:$true] %s33_s26 }
   0x8   :  { %39 = dma.hbm_to_vmem [thread:$0]  %s32_s22, 256, %s34_s26, [#allocation6], %s1787_s27, %s1787_s27, %s1788_s28  }
   0x9   :  { %1777 = dma.done.wait [#allocation3], 1024  }
   0xa   :  { %1778 = vsyncadd [#allocation3], 4294966272 }
   0xb   :  { %1779 = dma.done.wait [#allocation6], 256  }
   0xc   :  { %1780 = vsyncadd [#allocation6], 4294967040  ;;  %v1789_v0 = vmov 0   ;;  %v1790_v1 = vmov 1   ;;  %v1873_v2 = vld [vmem:[%s2776_s0] sm:$0xff]  ;;  %v1883_v5 = vld [vmem:[%s2776_s0 + $0x8] sm:$0xff]  ;;  %v2781_v61 = vlaneseq }
   0xd   :  { %1533 = vset.pattern.permute.xlu1 %v1789_v0  ;;  %1534 = vset.pattern.permute.xlu0 %v1790_v1  ;;  %v1875_v3 = vld [vmem:[#allocation5] sm:$0xff]  ;;  %v52_v4 = vmul.f32 %v1873_v2, %v1873_v2  ;;  %v1885_v6 = vld [vmem:[#allocation5 + $0x8] sm:$0xff]  ;;  %v53_v7 = vmul.f32 %v1883_v5, %v1883_v5  ;;  %s1791_s5 = smov 1   ;;  %s1792_s0 = smov 2   ;;  %v1793_v8 = vmov 3   ;;  %v1794_v9 = vmov 4  }
   0xe   :  { %166 = vperm.xlu1 %1533, %v1875_v3   ;;  %195 = vrot.lane.b32.xlu2 %v1875_v3, %s1791_s5  ;;  %v1795_v10 = vmov 5   ;;  %s1796_s6 = smov 5   ;;  %v1474_v11 = vld [vmem:[#allocation2 + $0x38] sm:$0xff]  ;;  %v1473_v12 = vld [vmem:[#allocation2 + $0x30] sm:$0xff]  ;;  %v1472_v13 = vld [vmem:[#allocation2 + $0x28] sm:$0xff]  ;;  %v1797_v14 = vmov 6  }
   0xf   :  { %54 = vadd.xlane.f32.xlu0 %v52_v4  ;;  %147 = vmatpush.bf16.msra.mxu0 %v1474_v11  ;;  %v1471_v15 = vld [vmem:[#allocation2 + $0x20] sm:$0xff]  ;;  %v1470_v16 = vld [vmem:[#allocation2 + $0x18] sm:$0xff]  ;;  %v1469_v17 = vld [vmem:[#allocation2 + $0x10] sm:$0xff]  ;;  %s1798_s7 = smov 6   ;;  %v1799_v22 = vmov 2   ;;  %v1800_v23 = vmov 7  }
  0x10   :  { %v1468_v18 = vld [vmem:[#allocation2 + $0x8] sm:$0xff]  ;;  %v1467_v19 = vld [vmem:[#allocation2] sm:$0xff]  ;;  %1537 = vset.pattern.permute.xlu2 %v1799_v22  ;;  %s1801_s8 = smov 3   ;;  %v1951_v63 = vand.u32 127, %v2781_v61  ;;  %s1803_s9 = smov 7  }
  0x11   :  { %s1806_s10 = smov 127   ;;  %s1807_s11 = smov 125  }
  0x12   :  { %s1809_s12 = smov 124   ;;  %s1810_s13 = smov 126  }
  0x13   :  { %148 = vmatpush.bf16.msra.mxu0 %v1473_v12  ;;  %s1811_s14 = smov 123   ;;  %s1812_s15 = smov 122  }
  0x14   :  { %s1813_s16 = smov 121   ;;  %s1814_s17 = smov 9  }
  0x15   :  { %s1816_s18 = smov 120   ;;  %s1817_s19 = smov 10  }
  0x16   :  { %169 = vperm.xlu1 %1533, %v1885_v6   ;;  %197 = vrot.lane.b32.xlu2 %v1885_v6, %s1791_s5  ;;  %s1823_s20 = smov 11   ;;  %s1824_s21 = smov 12  }
  0x17   :  { %56 = vadd.xlane.f32.xlu0 %v53_v7  ;;  %149 = vmatpush.bf16.msra.mxu0 %v1472_v13  ;;  %s1825_s22 = smov 14   ;;  %s1826_s23 = smov 13  }
  0x18   :  { %s1828_s25 = smov 15   ;;  %s1829_s26 = smov 117  }
  0x19   :  { %s1830_s27 = smov 119   ;;  %s1832_s1 = smov 116  }
  0x1a   :  { %s1833_s2 = smov 115   ;;  %s1834_s29 = smov 114  }
  0x1b   :  { %150 = vmatpush.bf16.msra.mxu0 %v1471_v15  ;;  %s1835_s30 = smov 113  }
  0x1e   :  { %1535 = vset.pattern.permute.xlu1 %v1790_v1  ;;  %231 = vperm.xlu2 %1537, %v1885_v6  }
  0x1f   :  { %185 = vperm.xlu1 %1535, %v1885_v6   ;;  %151 = vmatpush.bf16.msra.mxu0 %v1470_v16 }
  0x23   :  { %152 = vmatpush.bf16.msra.mxu0 %v1469_v17 }
  0x26   :  { %313 = vrot.lane.b32.xlu2 %v1875_v3, %s1801_s8 }
  0x27   :  { %243 = vrot.lane.b32.xlu1 %v1885_v6, %s1792_s0  ;;  %153 = vmatpush.bf16.msra.mxu0 %v1468_v18 }
  0x28   :  { %1538 = vset.pattern.permute.xlu1 %v1793_v8  ;;  %1540 = vset.pattern.permute.xlu2 %v1794_v9 }
  0x2b   :  { %182 = vperm.xlu0 %1534, %v1875_v3   ;;  %154 = vmatpush.bf16.msra.mxu0 %v1467_v19 }
  0x2e   :  { %315 = vrot.lane.b32.xlu2 %v1885_v6, %s1801_s8 }
  0x2f   :  { %300 = vperm.xlu1 %1538, %v1875_v3  }
  0x33   :  { %1536 = vset.pattern.permute.xlu0 %v1799_v22 }
  0x34   :  { %228 = vperm.xlu0 %1536, %v1875_v3  }
  0x36   :  { %372 = vperm.xlu2 %1540, %v1875_v3  }
  0x37   :  { %1541 = vset.pattern.permute.xlu1 %v1794_v9 }
  0x38   :  { %375 = vperm.xlu1 %1541, %v1885_v6  }
  0x3c   :  { %241 = vrot.lane.b32.xlu0 %v1875_v3, %s1792_s0 }
  0x3d   :  { %1539 = vset.pattern.permute.xlu0 %v1793_v8 }
  0x40   :  { %385 = vrot.lane.b32.xlu1 %v1875_v3, %s1785_s24 }
  0x41   :  { %1542 = vset.pattern.permute.xlu1 %v1795_v10 }
  0x44   :  { %303 = vperm.xlu0 %1539, %v1885_v6  }
  0x48   :  { %387 = vrot.lane.b32.xlu1 %v1885_v6, %s1785_s24 }
  0x50   :  { %444 = vperm.xlu1 %1542, %v1875_v3  }
  0x58   :  { %447 = vperm.xlu1 %1542, %v1885_v6  }
  0x60   :  { %457 = vrot.lane.b32.xlu1 %v1875_v3, %s1796_s6 }
  0x61   :  { %1543 = vset.pattern.permute.xlu1 %v1797_v14 }
  0x68   :  { %459 = vrot.lane.b32.xlu1 %v1885_v6, %s1796_s6  ;;  %v1942_v54 = vpop.permute.xlu2 %195 }
  0x70   :  { %516 = vperm.xlu1 %1543, %v1875_v3   ;;  %v1946_v57 = vpop.permute.xlu2 %197 }
  0x78   :  { %519 = vperm.xlu1 %1543, %v1885_v6   ;;  %v232_v60 = vpop.permute.xlu2 %231 }
  0x79   :  { %vm234_vm12 = vcmp.eq.s32.totalorder %v1951_v63, %v232_v60 }
  0x80   :  { %529 = vrot.lane.b32.xlu1 %v1875_v3, %s1798_s7  ;;  %v167_v37 = vpop.permute.xlu1 %166  ;;  %v1954_v1 = vpop.permute.xlu2 %313 }
  0x81   :  { %1544 = vset.pattern.permute.xlu1 %v1800_v23  ;;  %vm171_vm8 = vcmp.eq.s32.totalorder %v1951_v63, %v167_v37 }
  0x82   :  { %v55_v20 = vpop.xlane.xlu0 %54 }
  0x83   :  { %v58_v21 = vmax.f32 %v55_v20, 1e-12  ;;  %v1802_v20 = vmov 8  }
  0x84   :  { %1546 = vset.pattern.permute.xlu0 %v1802_v20 }
  0x85   :  { %1567 = vrsqrt.f32 %v58_v21  ;;  %vm66_vm1 = vweird.f32 %v58_v21 }
  0x88   :  { %531 = vrot.lane.b32.xlu1 %v1885_v6, %s1798_s7  ;;  %v1930_v44 = vpop.permute.xlu1 %169  ;;  %v1972_v13 = vpop.permute.xlu2 %315 }
  0x8a   :  { %v57_v24 = vpop.xlane.xlu0 %56 }
  0x8b   :  { %v1568_v25 = vpop.eup %1567  ;;  %v59_v26 = vmax.f32 %v57_v24, 1e-12 }
  0x8c   :  { %v61_v27 = vmul.f32 %v1568_v25, %v58_v21  ;;  %vm67_vm0 = vweird.f32 %v1568_v25 }
  0x8d   :  { %1569 = vrsqrt.f32 %v59_v26  ;;  %vm68_vm3 = vmor %vm66_vm1, %vm67_vm0  ;;  %vm76_vm4 = vweird.f32 %v59_v26 }
  0x8e   :  { %v62_v28 = vmul.f32 %v1568_v25, %v61_v27 }
  0x90   :  { %588 = vperm.xlu1 %1544, %v1875_v3   ;;  %v63_v29 = vmul.f32 0.5, %v62_v28  ;;  %v373_v19 = vpop.permute.xlu2 %372 }
  0x91   :  { %v186_v45 = vpop.permute.xlu1 %185  ;;  %vm377_vm15 = vcmp.eq.s32.totalorder %v1951_v63, %v373_v19  ;;  %v1808_v19 = vmov 10  }
  0x92   :  { %v64_v31 = vsub.f32 1.5, %v63_v29  ;;  %vm188_vm11 = vcmp.eq.s32.totalorder %v1951_v63, %v186_v45  ;;  %1550 = vset.pattern.permute.xlu2 %v1808_v19 }
  0x93   :  { %v1570_v30 = vpop.eup %1569 }
  0x94   :  { %v71_v32 = vmul.f32 %v1570_v30, %v59_v26  ;;  %v65_v35 = vmul.f32 %v1568_v25, %v64_v31  ;;  %vm77_vm2 = vweird.f32 %v1570_v30 }
  0x95   :  { %vm78_vm5 = vmor %vm76_vm4, %vm77_vm2 }
  0x96   :  { %v72_v33 = vmul.f32 %v1570_v30, %v71_v32  ;;  %v69_v38 = vsel %vm68_vm3, %v1568_v25, %v65_v35  ;;  %vm172_vm3 = vcmp.eq.s32.totalorder %v1951_v63, %v1930_v44  ;;  %v1805_v35 = vmov 0.0  }
  0x97   :  { %v80_v41 = vmul.f32 %v69_v38, %v1873_v2 }
  0x98   :  { %591 = vperm.xlu1 %1544, %v1885_v6   ;;  %v73_v34 = vmul.f32 0.5, %v72_v33 }
  0x99   :  { %v1932_v46 = vpop.permute.xlu1 %243 }
  0x9a   :  { %v74_v36 = vsub.f32 1.5, %v73_v34 }
  0x9c   :  { %v75_v39 = vmul.f32 %v1570_v30, %v74_v36 }
  0x9d   :  { %v183_v55 = vpop.permute.xlu0 %182 }
  0x9e   :  { %v79_v40 = vsel %vm78_vm5, %v1570_v30, %v75_v39  ;;  %vm187_vm10 = vcmp.eq.s32.totalorder %v1951_v63, %v183_v55  ;;  %v1804_v30 = vmov 9  }
  0x9f   :  { %v81_v42 = vmul.f32 %v79_v40, %v1883_v5 }
  0xa0   :  { %1545 = vset.pattern.permute.xlu1 %v1802_v20 }
  0xa1   :  { %v82_v43 = vpack.c.bf16 %v81_v42, %v80_v41  ;;  %v301_v47 = vpop.permute.xlu1 %300 }
  0xa2   :  { %vm305_vm7 = vcmp.eq.s32.totalorder %v1951_v63, %v301_v47 }
  0xa3   :  { %155 = vmatmul.bf16.vlgmr.msra.gmra.mxu0 %v82_v43 }
  0xa6   :  { %v229_v58 = vpop.permute.xlu0 %228 }
  0xa7   :  { %vm233_vm13 = vcmp.eq.s32.totalorder %v1951_v63, %v229_v58 }
  0xaa   :  { %v376_v48 = vpop.permute.xlu1 %375 }
  0xab   :  { %vm378_vm14 = vcmp.eq.s32.totalorder %v1951_v63, %v376_v48 }
  0xae   :  { %v1948_v62 = vpop.permute.xlu0 %241 }
  0xb2   :  { %v1934_v49 = vpop.permute.xlu1 %385 }
  0xb6   :  { %v304_v8 = vpop.permute.xlu0 %303 }
  0xb7   :  { %vm306_vm9 = vcmp.eq.s32.totalorder %v1951_v63, %v304_v8 }
  0xba   :  { %v1936_v50 = vpop.permute.xlu1 %387 }
  0xc2   :  { %v1938_v51 = vpop.permute.xlu1 %444 }
  0xc3   :  { %vm449_vm2 = vcmp.eq.s32.totalorder %v1951_v63, %v1938_v51 }
  0xca   :  { %v448_v52 = vpop.permute.xlu1 %447 }
  0xcb   :  { %vm450_vm0 = vcmp.eq.s32.totalorder %v1951_v63, %v448_v52 }
  0xd2   :  { %v1940_v53 = vpop.permute.xlu1 %457 }
  0xda   :  { %v1944_v56 = vpop.permute.xlu1 %459 }
  0xe2   :  { %v517_v59 = vpop.permute.xlu1 %516 }
  0xe3   :  { %vm521_vm6 = vcmp.eq.s32.totalorder %v1951_v63, %v517_v59 }
  0xea   :  { %v520_v0 = vpop.permute.xlu1 %519 }
  0xeb   :  { %vm522_vm4 = vcmp.eq.s32.totalorder %v1951_v63, %v520_v0 }
  0xf2   :  { %v1964_v9 = vpop.permute.xlu1 %529 }
  0xfa   :  { %v1978_v15 = vpop.permute.xlu1 %531 }
 0x102   :  { %v589_v23 = vpop.permute.xlu1 %588 }
 0x103   :  { %vm593_vm1 = vcmp.eq.s32.totalorder %v1951_v63, %v589_v23 }
 0x10a   :  { %v592_v28 = vpop.permute.xlu1 %591 }
 0x10b   :  { %vm594_vm5 = vcmp.eq.s32.totalorder %v1951_v63, %v592_v28 }
 0x120   :  { %v1956_v2 = vpop.f32.mrf.mxu0 }
 0x121   :  { %v523_v4 = vsel %vm521_vm6, %v1956_v2, 0.0  ;;  %v307_v5 = vsel %vm305_vm7, %v1956_v2, 0.0  ;;  %v173_v7 = vsel %vm171_vm8, %v1956_v2, 0.0  ;;  %v189_v14 = vsel %vm187_vm10, %v1956_v2, 0.0 }
 0x122   :  { %525 = vadd.xlane.f32.xlu0 %v523_v4  ;;  %309 = vadd.xlane.f32.xlu1 %v307_v5  ;;  %v235_v18 = vsel %vm233_vm13, %v1956_v2, 0.0  ;;  %v379_v22 = vsel %vm377_vm15, %v1956_v2, 0.0  ;;  %v595_v24 = vsel %vm593_vm1, %v1956_v2, 0.0  ;;  %v451_v25 = vsel %vm449_vm2, %v1956_v2, 0.0 }
 0x123   :  { %175 = vadd.xlane.f32.xlu2 %v173_v7  ;;  %vm245_vm6 = vcmp.eq.s32.totalorder %v1875_v3, %v1948_v62  ;;  %vm389_vm10 = vcmp.eq.s32.totalorder %v1875_v3, %v1934_v49  ;;  %vm533_vm13 = vcmp.eq.s32.totalorder %v1875_v3, %v1964_v9  ;;  %vm462_vm1 = vcmp.eq.s32.totalorder %v1885_v6, %v1944_v56 }
 0x124   :  { %v1435_v36 = vsel %vm245_vm6, 1.0, %v1805_v35  ;;  %v1439_v5 = vsel %vm389_vm10, 1.0, %v1805_v35  ;;  %v1443_v20 = vsel %vm533_vm13, 1.0, %v1805_v35  ;;  %vm534_vm2 = vcmp.eq.s32.totalorder %v1885_v6, %v1978_v15 }
 0x125   :  { %v251_v38 = vmul.f32 1000000.0, %v1435_v36  ;;  %v395_v8 = vmul.f32 1000000.0, %v1439_v5  ;;  %v539_v23 = vmul.f32 1000000.0, %v1443_v20  ;;  %vm246_vm6 = vcmp.eq.s32.totalorder %v1885_v6, %v1932_v46 }
 0x126   :  { %v1444_v56 = vsel %vm534_vm2, 1.0, %v1805_v35 }
 0x128   :  { %v1967_v10 = vpop.f32.mrf.mxu0 }
 0x129   :  { %v190_v11 = vsel %vm188_vm11, %v1967_v10, 0.0  ;;  %v308_v12 = vsel %vm306_vm9, %v1967_v10, 0.0  ;;  %v236_v16 = vsel %vm234_vm12, %v1967_v10, 0.0  ;;  %v380_v17 = vsel %vm378_vm14, %v1967_v10, 0.0 }
 0x12a   :  { %193 = vadd.xlane.f32.xlu1 %v190_v11  ;;  %311 = vadd.xlane.f32.xlu0 %v308_v12  ;;  %v452_v21 = vsel %vm450_vm0, %v1967_v10, 0.0  ;;  %v174_v26 = vsel %vm172_vm3, %v1967_v10, 0.0  ;;  %v524_v27 = vsel %vm522_vm4, %v1967_v10, 0.0  ;;  %v596_v29 = vsel %vm594_vm5, %v1967_v10, 0.0 }
 0x12b   :  { %191 = vadd.xlane.f32.xlu2 %v189_v14  ;;  %vm461_vm11 = vcmp.eq.s32.totalorder %v1875_v3, %v1940_v53  ;;  %vm317_vm12 = vcmp.eq.s32.totalorder %v1875_v3, %v1954_v1  ;;  %vm318_vm14 = vcmp.eq.s32.totalorder %v1885_v6, %v1972_v13  ;;  %vm390_vm0 = vcmp.eq.s32.totalorder %v1885_v6, %v1936_v50 }
 0x12c   :  { %v1441_v12 = vsel %vm461_vm11, 1.0, %v1805_v35  ;;  %v1437_v14 = vsel %vm317_vm12, 1.0, %v1805_v35 }
 0x132   :  { %239 = vadd.xlane.f32.xlu1 %v236_v16  ;;  %383 = vadd.xlane.f32.xlu0 %v380_v17  ;;  %v467_v17 = vmul.f32 1000000.0, %v1441_v12 }
 0x133   :  { %237 = vadd.xlane.f32.xlu2 %v235_v18  ;;  %v323_v18 = vmul.f32 1000000.0, %v1437_v14 }
 0x13a   :  { %455 = vadd.xlane.f32.xlu0 %v452_v21  ;;  %v1438_v21 = vsel %vm318_vm14, 1.0, %v1805_v35 }
 0x13b   :  { %381 = vadd.xlane.f32.xlu2 %v379_v22 }
 0x142   :  { %597 = vadd.xlane.f32.xlu0 %v595_v24  ;;  %v324_v24 = vmul.f32 1000000.0, %v1438_v21 }
 0x143   :  { %453 = vadd.xlane.f32.xlu2 %v451_v25 }
 0x14b   :  { %177 = vadd.xlane.f32.xlu2 %v174_v26  ;;  %601 = vrot.lane.b32.xlu1 %v1875_v3, %s1803_s9 }
 0x153   :  { %527 = vadd.xlane.f32.xlu2 %v524_v27  ;;  %603 = vrot.lane.b32.xlu1 %v1885_v6, %s1803_s9 }
 0x156   :  { %663 = vperm.xlu0 %1546, %v1885_v6  }
 0x15b   :  { %599 = vadd.xlane.f32.xlu2 %v596_v29  ;;  %660 = vperm.xlu1 %1545, %v1875_v3  }
 0x15e   :  { %673 = vrot.lane.b32.xlu0 %v1875_v3, %s1788_s28 }
 0x15f   :  { %1547 = vset.pattern.permute.xlu0 %v1804_v30 }
 0x163   :  { %1548 = vset.pattern.permute.xlu1 %v1804_v30 }
 0x166   :  { %675 = vrot.lane.b32.xlu0 %v1885_v6, %s1788_s28 }
 0x16e   :  { %732 = vperm.xlu0 %1547, %v1875_v3  }
 0x176   :  { %1549 = vset.pattern.permute.xlu0 %v1808_v19 }
 0x195   :  { %v2012_v32 = vpop.xlane.xlu0 %525  ;;  %v310_v34 = vpop.xlane.xlu1 %309 }
 0x196   :  { %v2010_v31 = vpop.xlane.xlu2 %175  ;;  %v325_v1 = vsub.f32 %v310_v34, %v323_v18  ;;  %v541_v9 = vsub.f32 %v2012_v32, %v539_v23  ;;  %v1440_v32 = vsel %vm390_vm0, 1.0, %v1805_v35 }
 0x197   :  { %v396_v36 = vmul.f32 1000000.0, %v1440_v32 }
 0x198   :  { %v2067_v25 = vmul.f32 1.4285715, %v325_v1  ;;  %v2077_v27 = vmul.f32 1.4285715, %v541_v9 }
 0x19d   :  { %v2019_v37 = vpop.xlane.xlu0 %311  ;;  %v2023_v42 = vpop.xlane.xlu1 %193 }
 0x19e   :  { %v2014_v33 = vpop.xlane.xlu2 %191  ;;  %v326_v26 = vsub.f32 %v2019_v37, %v324_v24 }
 0x1a0   :  { %v2079_v29 = vmul.f32 1.4285715, %v326_v26 }
 0x1a5   :  { %v2027_v43 = vpop.xlane.xlu0 %383  ;;  %v2029_v44 = vpop.xlane.xlu1 %239 }
 0x1a6   :  { %v238_v39 = vpop.xlane.xlu2 %237  ;;  %v398_v37 = vsub.f32 %v2027_v43, %v396_v36 }
 0x1a7   :  { %v253_v40 = vsub.f32 %v238_v39, %v251_v38  ;;  %v1442_v38 = vsel %vm462_vm1, 1.0, %v1805_v35 }
 0x1a8   :  { %v2099_v39 = vmul.f32 1.4285715, %v398_v37 }
 0x1a9   :  { %v2021_v41 = vmul.f32 1.4285715, %v253_v40  ;;  %v468_v40 = vmul.f32 1000000.0, %v1442_v38 }
 0x1ab   :  { %259 = vrot.lane.b32.xlu0 %v2021_v41, %s1806_s10 }
 0x1ad   :  { %v2031_v45 = vpop.xlane.xlu0 %455 }
 0x1ae   :  { %v382_v7 = vpop.xlane.xlu2 %381 }
 0x1af   :  { %v397_v11 = vsub.f32 %v382_v7, %v395_v8 }
 0x1b1   :  { %v2055_v16 = vmul.f32 1.4285715, %v397_v11 }
 0x1b5   :  { %v598_v48 = vpop.xlane.xlu0 %597 }
 0x1b6   :  { %v454_v49 = vpop.xlane.xlu2 %453 }
 0x1b7   :  { %v469_v53 = vsub.f32 %v454_v49, %v467_v17  ;;  %v1436_v49 = vsel %vm246_vm6, 1.0, %v1805_v35 }
 0x1b9   :  { %v2065_v22 = vmul.f32 1.4285715, %v469_v53 }
 0x1bd   :  { %v602_v47 = vpop.permute.xlu1 %601 }
 0x1be   :  { %vm605_vm15 = vcmp.eq.s32.totalorder %v1875_v3, %v602_v47  ;;  %v2096_v50 = vpop.xlane.xlu2 %177  ;;  %v470_v47 = vsub.f32 %v2031_v45, %v468_v40 }
 0x1bf   :  { %v1445_v13 = vsel %vm605_vm15, 1.0, %v1805_v35 }
 0x1c0   :  { %v611_v28 = vmul.f32 1000000.0, %v1445_v13 }
 0x1c2   :  { %v613_v30 = vsub.f32 %v598_v48, %v611_v28  ;;  %v2107_v48 = vmul.f32 1.4285715, %v470_v47 }
 0x1c4   :  { %v2088_v34 = vmul.f32 1.4285715, %v613_v30 }
 0x1c5   :  { %v2033_v51 = vpop.permute.xlu1 %603 }
 0x1c6   :  { %v528_v43 = vpop.xlane.xlu2 %527  ;;  %vm606_vm3 = vcmp.eq.s32.totalorder %v1885_v6, %v2033_v51 }
 0x1c8   :  { %v664_v52 = vpop.permute.xlu0 %663 }
 0x1c9   :  { %vm666_vm7 = vcmp.eq.s32.totalorder %v1951_v63, %v664_v52  ;;  %v540_v52 = vmul.f32 1000000.0, %v1444_v56 }
 0x1ca   :  { %v668_v55 = vsel %vm666_vm7, %v1967_v10, 0.0  ;;  %vm199_vm7 = vcmp.eq.s32.totalorder %v1875_v3, %v1942_v54  ;;  %v2157_v54 = vmul.f32 1.4285715, %v2010_v31 }
 0x1cb   :  { %671 = vadd.xlane.f32.xlu2 %v668_v55  ;;  %v542_v55 = vsub.f32 %v528_v43, %v540_v52  ;;  %v1433_v46 = vsel %vm199_vm7, 1.0, %v1805_v35  ;;  %v2194_v52 = vmul.f32 1.4285715, %v2096_v50 }
 0x1cc   :  { %v205_v53 = vmul.f32 1000000.0, %v1433_v46 }
 0x1cd   :  { %v661_v58 = vpop.permute.xlu1 %660 }
 0x1ce   :  { %vm665_vm8 = vcmp.eq.s32.totalorder %v1951_v63, %v661_v58  ;;  %v1446_v58 = vsel %vm606_vm3, 1.0, %v1805_v35  ;;  %v600_v15 = vpop.xlane.xlu2 %599  ;;  %v207_v1 = vsub.f32 %v2014_v33, %v205_v53 }
 0x1cf   :  { %v667_v59 = vsel %vm665_vm8, %v1956_v2, 0.0 }
 0x1d0   :  { %669 = vadd.xlane.f32.xlu1 %v667_v59  ;;  %v2039_v60 = vpop.permute.xlu0 %673  ;;  %v2114_v59 = vmul.f32 1.4285715, %v542_v55 }
 0x1d1   :  { %vm677_vm5 = vcmp.eq.s32.totalorder %v1875_v3, %v2039_v60  ;;  %v252_v60 = vmul.f32 1000000.0, %v1436_v49 }
 0x1d2   :  { %v1447_v7 = vsel %vm677_vm5, 1.0, %v1805_v35 }
 0x1d3   :  { %v683_v12 = vmul.f32 1000000.0, %v1447_v7  ;;  %v254_v18 = vsub.f32 %v2029_v44, %v252_v60  ;;  %v2154_v44 = vmul.f32 1.4285715, %v207_v1  ;;  %v1815_v7 = vmov 11  }
 0x1d5   :  { %v2144_v19 = vmul.f32 1.4285715, %v254_v18  ;;  %v2163_v33 = vmax.f32 %v2157_v54, %v2154_v44 }
 0x1d8   :  { %v2041_v62 = vpop.permute.xlu0 %675 }
 0x1d9   :  { %vm678_vm4 = vcmp.eq.s32.totalorder %v1885_v6, %v2041_v62 }
 0x1da   :  { %v1448_v51 = vsel %vm678_vm4, 1.0, %v1805_v35 }
 0x1db   :  { %v2127_v5 = vmul.f32 1000000.0, %v1448_v51 }
 0x1e0   :  { %v733_v0 = vpop.permute.xlu0 %732 }
 0x1e1   :  { %vm737_vm9 = vcmp.eq.s32.totalorder %v1951_v63, %v733_v0  ;;  %v612_v0 = vmul.f32 1000000.0, %v1446_v58 }
 0x1e2   :  { %v739_v4 = vsel %vm737_vm9, %v1956_v2, 0.0  ;;  %vm200_vm9 = vcmp.eq.s32.totalorder %v1885_v6, %v1946_v57 }
 0x1e3   :  { %741 = vadd.xlane.f32.xlu2 %v739_v4  ;;  %v614_v45 = vsub.f32 %v600_v15, %v612_v0  ;;  %v1434_v47 = vsel %vm200_vm9, 1.0, %v1805_v35 }
 0x1e4   :  { %v206_v56 = vmul.f32 1000000.0, %v1434_v47 }
 0x1e5   :  { %v2118_v4 = vmul.f32 1.4285715, %v614_v45 }
 0x1e6   :  { %v208_v43 = vsub.f32 %v2023_v42, %v206_v56 }
 0x1e8   :  { %v210_v55 = vmul.f32 1.4285715, %v208_v43 }
 0x1e9   :  { %735 = vperm.xlu1 %1548, %v1885_v6  }
 0x1ea   :  { %v212_v15 = vmax.f32 %v2194_v52, %v210_v55 }
 0x1ec   :  { %v214_v45 = vsub.f32 %v2194_v52, %v212_v15  ;;  %v220_v51 = vsub.f32 %v210_v55, %v212_v15 }
 0x1ee   :  { %v217_v57 = vmul.f32 1.442695, %v214_v45 }
 0x1f0   :  { %1571 = vpow2.f32 %v217_v57 }
 0x1f1   :  { %403 = vrot.lane.b32.xlu1 %v2055_v16, %s1807_s11 }
 0x1f9   :  { %475 = vrot.lane.b32.xlu1 %v2065_v22, %s1809_s12 }
 0x1fb   :  { %331 = vrot.lane.b32.xlu2 %v2067_v25, %s1810_s13 }
 0x201   :  { %547 = vrot.lane.b32.xlu1 %v2077_v27, %s1811_s14 }
 0x203   :  { %333 = vrot.lane.b32.xlu2 %v2079_v29, %s1810_s13 }
 0x209   :  { %619 = vrot.lane.b32.xlu1 %v2088_v34, %s1812_s15 }
 0x20b   :  { %807 = vperm.xlu2 %1550, %v1885_v6  }
 0x211   :  { %405 = vrot.lane.b32.xlu1 %v2099_v39, %s1807_s11 }
 0x213   :  { %1551 = vset.pattern.permute.xlu2 %v1815_v7 }
 0x219   :  { %477 = vrot.lane.b32.xlu1 %v2107_v48, %s1809_s12 }
 0x21d   :  { %v260_v23 = vpop.permute.xlu0 %259 }
 0x21e   :  { %v2166_v13 = vmax.f32 %v2163_v33, %v260_v23  ;;  %v1572_v23 = vpop.eup %1571 }
 0x221   :  { %549 = vrot.lane.b32.xlu1 %v2114_v59, %s1811_s14 }
 0x229   :  { %621 = vrot.lane.b32.xlu1 %v2118_v4, %s1812_s15 }
 0x23e   :  { %v2130_v8 = vpop.xlane.xlu2 %671 }
 0x23f   :  { %v686_v11 = vsub.f32 %v2130_v8, %v2127_v5  ;;  %v1819_v5 = vmov 12   ;;  %v1820_v8 = vmov 14  }
 0x243   :  { %v670_v14 = vpop.xlane.xlu1 %669 }
 0x244   :  { %v685_v62 = vsub.f32 %v670_v14, %v683_v12  ;;  %v223_v14 = vmul.f32 1.442695, %v220_v51 }
 0x246   :  { %v2137_v17 = vmul.f32 1.4285715, %v685_v62  ;;  %1573 = vpow2.f32 %v223_v14 }
 0x248   :  { %691 = vrot.lane.b32.xlu0 %v2137_v17, %s1813_s16 }
 0x250   :  { %261 = vrot.lane.b32.xlu0 %v2144_v19, %s1806_s10 }
 0x256   :  { %v2150_v20 = vpop.xlane.xlu2 %741 }
 0x258   :  { %745 = vrot.lane.b32.xlu0 %v1875_v3, %s1814_s17 }
 0x25b   :  { %v736_v21 = vpop.permute.xlu1 %735 }
 0x25c   :  { %vm738_vm8 = vcmp.eq.s32.totalorder %v1951_v63, %v736_v21 }
 0x25d   :  { %v740_v24 = vsel %vm738_vm8, %v1967_v10, 0.0 }
 0x25e   :  { %743 = vadd.xlane.f32.xlu1 %v740_v24  ;;  %v332_v9 = vpop.permute.xlu2 %331 }
 0x25f   :  { %v2171_v31 = vmax.f32 %v2166_v13, %v332_v9 }
 0x260   :  { %747 = vrot.lane.b32.xlu0 %v1885_v6, %s1814_s17 }
 0x263   :  { %v404_v26 = vpop.permute.xlu1 %403 }
 0x264   :  { %v2174_v28 = vmax.f32 %v2171_v31, %v404_v26  ;;  %v1574_v26 = vpop.eup %1573 }
 0x266   :  { %v334_v42 = vpop.permute.xlu2 %333 }
 0x26b   :  { %v476_v32 = vpop.permute.xlu1 %475 }
 0x26c   :  { %v2179_v36 = vmax.f32 %v2174_v28, %v476_v32 }
 0x273   :  { %v548_v38 = vpop.permute.xlu1 %547 }
 0x274   :  { %v2219_v32 = vmax.f32 %v2179_v36, %v548_v38 }
 0x277   :  { %349 = vrot.lane.b32.xlu1 %v2171_v31, %s1792_s0 }
 0x27b   :  { %v620_v40 = vpop.permute.xlu1 %619 }
 0x27c   :  { %v2238_v57 = vmax.f32 %v2219_v32, %v620_v40  ;;  %v2251_v40 = vmul.f32 1.4285715, %v686_v11  ;;  %v808_v11 = vpop.permute.xlu2 %807 }
 0x27d   :  { %vm810_vm12 = vcmp.eq.s32.totalorder %v1951_v63, %v808_v11 }
 0x27f   :  { %421 = vrot.lane.b32.xlu1 %v2174_v28, %s1801_s8 }
 0x283   :  { %v406_v58 = vpop.permute.xlu1 %405 }
 0x287   :  { %493 = vrot.lane.b32.xlu1 %v2179_v36, %s1785_s24 }
 0x28b   :  { %v478_v12 = vpop.permute.xlu1 %477 }
 0x293   :  { %v550_v24 = vpop.permute.xlu1 %549 }
 0x2ba   :  { %v692_v0 = vpop.permute.xlu0 %691 }
 0x2c2   :  { %v262_v62 = vpop.permute.xlu0 %261 }
 0x2c3   :  { %v2198_v49 = vmax.f32 %v212_v15, %v262_v62  ;;  %v2254_v62 = vmax.f32 %v2238_v57, %v692_v0  ;;  %v1821_v0 = vmov 15  }
 0x2c5   :  { %v268_v50 = vsub.f32 %v212_v15, %v2198_v49  ;;  %v2202_v60 = vmax.f32 %v2198_v49, %v334_v42  ;;  %279 = vrot.lane.b32.xlu1 %v2198_v49, %s1791_s5 }
 0x2c7   :  { %v271_v18 = vmul.f32 1.442695, %v268_v50  ;;  %v340_v46 = vsub.f32 %v2198_v49, %v2202_v60  ;;  %351 = vrot.lane.b32.xlu2 %v2202_v60, %s1792_s0  ;;  %v2211_v53 = vmax.f32 %v2202_v60, %v406_v58  ;;  %v226_v58 = vadd.f32 %v1574_v26, %v1572_v23 }
 0x2c8   :  { %v219_v49 = vsub.f32 %v2154_v44, %v2163_v33 }
 0x2c9   :  { %v2214_v1 = vmax.f32 %v2211_v53, %v478_v12  ;;  %1575 = vpow2.f32 %v271_v18  ;;  %v622_v12 = vpop.permute.xlu1 %621  ;;  %v1818_v18 = vmov 13  }
 0x2ca   :  { %v746_v9 = vpop.permute.xlu0 %745  ;;  %1553 = vset.pattern.permute.xlu1 %v1818_v18  ;;  %v221_v44 = vmul.f32 1.442695, %v219_v49 }
 0x2cb   :  { %vm749_vm10 = vcmp.eq.s32.totalorder %v1875_v3, %v746_v9  ;;  %v2223_v47 = vmax.f32 %v2214_v1, %v550_v24  ;;  %v812_v24 = vsel %vm810_vm12, %v1967_v10, 0.0 }
 0x2cc   :  { %v1449_v56 = vsel %vm749_vm10, 1.0, %v1805_v35 }
 0x2cd   :  { %v755_v55 = vmul.f32 1000000.0, %v1449_v56  ;;  %565 = vrot.lane.b32.xlu1 %v2219_v32, %s1796_s6  ;;  %v1822_v56 = vmov 16  }
 0x2cf   :  { %v1576_v15 = vpop.eup %1575  ;;  %v757_v45 = vsub.f32 %v2150_v20, %v755_v55  ;;  %423 = vrot.lane.b32.xlu2 %v2211_v53, %s1801_s8 }
 0x2d0   :  { %v2233_v38 = vmul.f32 %v1576_v15, %v226_v58 }
 0x2d1   :  { %v2235_v51 = vmul.f32 1.4285715, %v757_v45  ;;  %v744_v42 = vpop.xlane.xlu1 %743 }
 0x2d2   :  { %v748_v7 = vpop.permute.xlu0 %747 }
 0x2d3   :  { %vm750_vm11 = vcmp.eq.s32.totalorder %v1885_v6, %v748_v7  ;;  %763 = vrot.lane.b32.xlu0 %v2235_v51, %s1816_s18 }
 0x2d4   :  { %v1450_v20 = vsel %vm750_vm11, 1.0, %v1805_v35 }
 0x2d5   :  { %637 = vrot.lane.b32.xlu1 %v2238_v57, %s1798_s7  ;;  %v756_v14 = vmul.f32 1000000.0, %v1450_v20 }
 0x2d7   :  { %817 = vrot.lane.b32.xlu2 %v1875_v3, %s1817_s19  ;;  %v758_v50 = vsub.f32 %v744_v42, %v756_v14  ;;  %v2294_v14 = vmax.f32 %v2223_v47, %v622_v12 }
 0x2d9   :  { %v2261_v23 = vmul.f32 1.4285715, %v758_v50 }
 0x2db   :  { %693 = vrot.lane.b32.xlu0 %v2251_v40, %s1813_s16 }
 0x2dd   :  { %709 = vrot.lane.b32.xlu1 %v2254_v62, %s1803_s9 }
 0x2df   :  { %876 = vperm.xlu2 %1551, %v1875_v3  }
 0x2e3   :  { %765 = vrot.lane.b32.xlu0 %v2261_v23, %s1816_s18 }
 0x2e7   :  { %879 = vperm.xlu2 %1551, %v1885_v6  }
 0x2e9   :  { %v350_v26 = vpop.permute.xlu1 %349 }
 0x2ea   :  { %v355_v11 = vsub.f32 %v2067_v25, %v350_v26 }
 0x2eb   :  { %804 = vperm.xlu0 %1549, %v1875_v3  }
 0x2ec   :  { %v357_v12 = vmul.f32 1.442695, %v355_v11 }
 0x2ee   :  { %1577 = vpow2.f32 %v357_v12 }
 0x2ef   :  { %1552 = vset.pattern.permute.xlu2 %v1819_v5 }
 0x2f0   :  { %948 = vperm.xlu2 %1552, %v1875_v3  }
 0x2f3   :  { %277 = vrot.lane.b32.xlu0 %v2166_v13, %s1791_s5 }
 0x2f4   :  { %1555 = vset.pattern.permute.xlu0 %v1820_v8  ;;  %v1578_v11 = vpop.eup %1577 }
 0x2f8   :  { %951 = vperm.xlu2 %1552, %v1885_v6  }
 0x300   :  { %1554 = vset.pattern.permute.xlu2 %v1818_v18 }
 0x301   :  { %1023 = vperm.xlu2 %1554, %v1885_v6  }
 0x309   :  { %495 = vrot.lane.b32.xlu2 %v2214_v1, %s1785_s24  ;;  %s1827_s24 = smov 16  }
 0x30a   :  { %1556 = vset.pattern.permute.xlu2 %v1820_v8 }
 0x311   :  { %1095 = vperm.xlu2 %1556, %v1885_v6   ;;  %v2282_v6 = vpop.permute.xlu1 %421 }
 0x319   :  { %1557 = vset.pattern.permute.xlu2 %v1821_v0  ;;  %v494_v20 = vpop.permute.xlu1 %493 }
 0x31a   :  { %1164 = vperm.xlu2 %1557, %v1875_v3   ;;  %v499_v12 = vsub.f32 %v2065_v22, %v494_v20 }
 0x31d   :  { %815 = vadd.xlane.f32.xlu0 %v812_v24 }
 0x321   :  { %v352_v9 = vpop.permute.xlu2 %351 }
 0x322   :  { %1559 = vset.pattern.permute.xlu2 %v1822_v56 }
 0x329   :  { %v2280_v55 = vpop.permute.xlu2 %423 }
 0x331   :  { %v2289_v7 = vpop.permute.xlu2 %817 }
 0x337   :  { %v280_v5 = vpop.permute.xlu1 %279 }
 0x339   :  { %v2302_v8 = vpop.permute.xlu2 %876 }
 0x33a   :  { %vm881_vm2 = vcmp.eq.s32.totalorder %v1951_v63, %v2302_v8 }
 0x341   :  { %v2315_v61 = vpop.permute.xlu2 %879 }
 0x342   :  { %vm882_vm1 = vcmp.eq.s32.totalorder %v1951_v63, %v2315_v61 }
 0x345   :  { %v764_v58 = vpop.permute.xlu0 %763 }
 0x346   :  { %v2285_v15 = vmax.f32 %v2254_v62, %v764_v58 }
 0x348   :  { %781 = vrot.lane.b32.xlu0 %v2285_v15, %s1788_s28 }
 0x34d   :  { %v694_v45 = vpop.permute.xlu0 %693 }
 0x34e   :  { %v2297_v42 = vmax.f32 %v2294_v14, %v694_v45  ;;  %v284_v45 = vsub.f32 %v2144_v19, %v280_v5  ;;  %v2322_v5 = vpop.permute.xlu2 %948 }
 0x34f   :  { %vm953_vm15 = vcmp.eq.s32.totalorder %v1951_v63, %v2322_v5 }
 0x350   :  { %567 = vrot.lane.b32.xlu0 %v2223_v47, %s1796_s6  ;;  %v287_v37 = vmul.f32 1.442695, %v284_v45  ;;  %v501_v45 = vmul.f32 1.442695, %v499_v12 }
 0x352   :  { %1579 = vpow2.f32 %v287_v37 }
 0x355   :  { %v766_v50 = vpop.permute.xlu0 %765 }
 0x356   :  { %v2300_v18 = vmax.f32 %v2297_v42, %v766_v50  ;;  %v566_v50 = vpop.permute.xlu1 %565  ;;  %v2329_v20 = vpop.permute.xlu2 %951 }
 0x357   :  { %v571_v43 = vsub.f32 %v2077_v27, %v566_v50  ;;  %vm954_vm3 = vcmp.eq.s32.totalorder %v1951_v63, %v2329_v20 }
 0x358   :  { %639 = vrot.lane.b32.xlu0 %v2294_v14, %s1798_s7  ;;  %783 = vrot.lane.b32.xlu2 %v2300_v18, %s1788_s28  ;;  %v1580_v21 = vpop.eup %1579  ;;  %s1831_s28 = smov 118  }
 0x35d   :  { %v805_v24 = vpop.permute.xlu0 %804 }
 0x35e   :  { %vm809_vm13 = vcmp.eq.s32.totalorder %v1951_v63, %v805_v24  ;;  %v638_v19 = vpop.permute.xlu1 %637 }
 0x35f   :  { %v811_v58 = vsel %vm809_vm13, %v1956_v2, 0.0 }
 0x360   :  { %711 = vrot.lane.b32.xlu0 %v2297_v42, %s1803_s9  ;;  %1236 = vperm.xlu2 %1559, %v1875_v3  }
 0x361   :  { %813 = vadd.xlane.f32.xlu1 %v811_v58  ;;  %v573_v58 = vmul.f32 1.442695, %v571_v43 }
 0x365   :  { %v278_v25 = vpop.permute.xlu0 %277 }
 0x366   :  { %v283_v26 = vsub.f32 %v2021_v41, %v278_v25  ;;  %v356_v41 = vsub.f32 %v2079_v29, %v352_v9  ;;  %v710_v37 = vpop.permute.xlu1 %709 }
 0x368   :  { %v285_v24 = vmul.f32 1.442695, %v283_v26  ;;  %1092 = vperm.xlu0 %1555, %v1875_v3   ;;  %363 = vrot.lane.b32.xlu2 %v1578_v11, %s1810_s13  ;;  %v643_v3 = vsub.f32 %v2088_v34, %v638_v19  ;;  %v359_v27 = vmul.f32 1.442695, %v356_v41  ;;  %v428_v34 = vsub.f32 %v2099_v39, %v2280_v55  ;;  %v2339_v11 = vpop.permute.xlu2 %1023 }
 0x369   :  { %v427_v39 = vsub.f32 %v2055_v16, %v2282_v6  ;;  %vm1026_vm7 = vcmp.eq.s32.totalorder %v1951_v63, %v2339_v11 }
 0x36a   :  { %1581 = vpow2.f32 %v285_v24  ;;  %v645_v22 = vmul.f32 1.442695, %v643_v3  ;;  %v431_v9 = vmul.f32 1.442695, %v428_v34 }
 0x36b   :  { %1583 = vpow2.f32 %v573_v58  ;;  %v429_v12 = vmul.f32 1.442695, %v427_v39 }
 0x36c   :  { %1585 = vpow2.f32 %v501_v45 }
 0x36d   :  { %1587 = vpow2.f32 %v645_v22 }
 0x36e   :  { %1589 = vpow2.f32 %v359_v27 }
 0x370   :  { %v1582_v30 = vpop.eup %1581  ;;  %293 = vrot.lane.b32.xlu2 %v1580_v21, %s1806_s10  ;;  %1566 = vset.pattern.permute.xlu0 %v1822_v56  ;;  %v715_v21 = vsub.f32 %v2137_v17, %v710_v37  ;;  %v2344_v17 = vld [vmem:[#allocation5 + $0x8] sm:$0xff]  ;;  %v496_v19 = vpop.permute.xlu2 %495 }
 0x371   :  { %291 = vrot.lane.b32.xlu0 %v1582_v30, %s1806_s10  ;;  %v1584_v43 = vpop.eup %1583  ;;  %v2336_v30 = vld [vmem:[#allocation5] sm:$0xff] }
 0x372   :  { %v1586_v50 = vpop.eup %1585  ;;  %v717_v29 = vmul.f32 1.442695, %v715_v21  ;;  %vm821_vm14 = vcmp.eq.s32.totalorder %v2336_v30, %v2289_v7 }
 0x373   :  { %v1588_v25 = vpop.eup %1587 }
 0x374   :  { %v1590_v26 = vpop.eup %1589  ;;  %1591 = vpow2.f32 %v717_v29 }
 0x375   :  { %1593 = vpow2.f32 %v431_v9 }
 0x376   :  { %1595 = vpow2.f32 %v429_v12  ;;  %v213_v12 = vsub.f32 %v2157_v54, %v2163_v33 }
 0x378   :  { %579 = vrot.lane.b32.xlu2 %v1584_v43, %s1811_s14  ;;  %v343_v43 = vmul.f32 1.442695, %v340_v46 }
 0x379   :  { %507 = vrot.lane.b32.xlu0 %v1586_v50, %s1809_s12 }
 0x37a   :  { %1020 = vperm.xlu1 %1553, %v2336_v30   ;;  %v1592_v55 = vpop.eup %1591 }
 0x37b   :  { %v1594_v24 = vpop.eup %1593 }
 0x37c   :  { %v1596_v16 = vpop.eup %1595 }
 0x380   :  { %651 = vrot.lane.b32.xlu2 %v1588_v25, %s1812_s15 }
 0x381   :  { %365 = vrot.lane.b32.xlu0 %v1590_v26, %s1810_s13 }
 0x382   :  { %1558 = vset.pattern.permute.xlu1 %v1821_v0  ;;  %v500_v0 = vsub.f32 %v2107_v48, %v496_v19  ;;  %v267_v19 = vsub.f32 %v2163_v33, %v2166_v13 }
 0x383   :  { %1167 = vperm.xlu1 %1558, %v2344_v17  }
 0x384   :  { %v503_v58 = vmul.f32 1.442695, %v500_v0  ;;  %v215_v0 = vmul.f32 1.442695, %v213_v12 }
 0x386   :  { %1597 = vpow2.f32 %v503_v58 }
 0x388   :  { %723 = vrot.lane.b32.xlu2 %v1592_v55, %s1813_s16 }
 0x389   :  { %437 = vrot.lane.b32.xlu0 %v1594_v24, %s1807_s11 }
 0x38b   :  { %1560 = vset.pattern.permute.xlu1 %v1822_v56  ;;  %v2360_v56 = vpop.permute.xlu2 %1095 }
 0x38c   :  { %1239 = vperm.xlu1 %1560, %v2344_v17   ;;  %v1598_v6 = vpop.eup %1597  ;;  %vm1098_vm4 = vcmp.eq.s32.totalorder %v1951_v63, %v2360_v56 }
 0x38d   :  { %v1100_v20 = vsel %vm1098_vm4, %v1967_v10, 0.0 }
 0x390   :  { %819 = vrot.lane.b32.xlu2 %v2344_v17, %s1817_s19  ;;  %v2368_v45 = vpop.xlane.xlu0 %815 }
 0x393   :  { %v2366_v48 = vpop.permute.xlu2 %1164 }
 0x394   :  { %435 = vrot.lane.b32.xlu1 %v1596_v16, %s1807_s11  ;;  %vm1169_vm10 = vcmp.eq.s32.totalorder %v1951_v63, %v2366_v48  ;;  %s1390_s11 = sshll.u32 %s2780_s4, 4  ;;  %s1391_s11 = int_to_ptr.hbm [resolvable:$true] %s1390_s11 }
 0x398   :  { %891 = vrot.lane.b32.xlu2 %v2344_v17, %s1823_s20 }
 0x39c   :  { %509 = vrot.lane.b32.xlu1 %v1598_v6, %s1809_s12 }
 0x3a0   :  { %961 = vrot.lane.b32.xlu2 %v2336_v30, %s1824_s21 }
 0x3a8   :  { %963 = vrot.lane.b32.xlu2 %v2344_v17, %s1824_s21 }
 0x3b2   :  { %v784_v3 = vpop.permute.xlu2 %783 }
 0x3b3   :  { %v788_v33 = vsub.f32 %v2261_v23, %v784_v3 }
 0x3ba   :  { %v2370_v41 = vpop.permute.xlu2 %1236  ;;  %v782_v22 = vpop.permute.xlu0 %781 }
 0x3bb   :  { %v787_v27 = vsub.f32 %v2235_v51, %v782_v22  ;;  %v269_v22 = vmul.f32 1.442695, %v267_v19  ;;  %vm1241_vm11 = vcmp.eq.s32.totalorder %v1951_v63, %v2370_v41 }
 0x3bd   :  { %v789_v37 = vmul.f32 1.442695, %v787_v27 }
 0x3bf   :  { %1599 = vpow2.f32 %v789_v37 }
 0x3c0   :  { %1601 = vpow2.f32 %v343_v43  ;;  %v339_v43 = vsub.f32 %v2166_v13, %v2171_v31 }
 0x3c2   :  { %v2376_v50 = vpop.permute.xlu2 %363  ;;  %v568_v21 = vpop.permute.xlu0 %567 }
 0x3c3   :  { %v572_v34 = vsub.f32 %v2114_v59, %v568_v21 }
 0x3c5   :  { %v1600_v29 = vpop.eup %1599  ;;  %v575_v9 = vmul.f32 1.442695, %v572_v34 }
 0x3c6   :  { %795 = vrot.lane.b32.xlu1 %v1600_v29, %s1816_s18  ;;  %v1602_v55 = vpop.eup %1601  ;;  %v791_v29 = vmul.f32 1.442695, %v788_v33 }
 0x3c7   :  { %1603 = vpow2.f32 %v575_v9 }
 0x3ca   :  { %v294_v25 = vpop.permute.xlu2 %293  ;;  %v640_v26 = vpop.permute.xlu0 %639 }
 0x3cb   :  { %v298_v51 = vadd.f32 %v294_v25, %v2233_v38  ;;  %v644_v39 = vsub.f32 %v2118_v4, %v640_v26  ;;  %v1451_v4 = vsel %vm821_vm14, 1.0, %v1805_v35  ;;  %v955_v38 = vsel %vm953_vm15, %v1956_v2, 0.0 }
 0x3cc   :  { %v2395_v5 = vmul.f32 1000000.0, %v1451_v4  ;;  %v2782_v26 = vsub.f32 %v2171_v31, %v2174_v28  ;;  %v2783_v31 = vsub.f32 %v2202_v60, %v2211_v53 }
 0x3cd   :  { %v1604_v46 = vpop.eup %1603  ;;  %v647_v59 = vmul.f32 1.442695, %v644_v39  ;;  %v346_v24 = vmul.f32 %v1602_v55, %v298_v51 }
 0x3ce   :  { %581 = vrot.lane.b32.xlu1 %v1604_v46, %s1811_s14  ;;  %v413_v23 = vmul.f32 1.442695, %v2782_v26  ;;  %v415_v19 = vmul.f32 1.442695, %v2783_v31 }
 0x3cf   :  { %1605 = vpow2.f32 %v647_v59 }
 0x3d0   :  { %1607 = vpow2.f32 %v221_v44 }
 0x3d1   :  { %957 = vadd.xlane.f32.xlu2 %v955_v38  ;;  %1609 = vpow2.f32 %v215_v0 }
 0x3d2   :  { %v712_v7 = vpop.permute.xlu0 %711 }
 0x3d3   :  { %v716_v58 = vsub.f32 %v2251_v40, %v712_v7  ;;  %v341_v40 = vmul.f32 1.442695, %v339_v43 }
 0x3d4   :  { %v2398_v16 = vpop.xlane.xlu1 %813 }
 0x3d5   :  { %v1606_v6 = vpop.eup %1605  ;;  %v719_v27 = vmul.f32 1.442695, %v716_v58  ;;  %v829_v37 = vsub.f32 %v2398_v16, %v2395_v5 }
 0x3d6   :  { %653 = vrot.lane.b32.xlu1 %v1606_v6, %s1812_s15  ;;  %v1608_v34 = vpop.eup %1607  ;;  %v2784_v6 = vsub.f32 %v2211_v53, %v2214_v1 }
 0x3d7   :  { %1611 = vpow2.f32 %v719_v27  ;;  %v1610_v9 = vpop.eup %1609  ;;  %v2506_v48 = vmul.f32 1.4285715, %v829_v37 }
 0x3d8   :  { %1613 = vpow2.f32 %v269_v22  ;;  %v225_v3 = vadd.f32 %v1610_v9, %v1608_v34  ;;  %v487_v22 = vmul.f32 1.442695, %v2784_v6 }
 0x3d9   :  { %1615 = vpow2.f32 %v341_v40 }
 0x3da   :  { %v2406_v21 = vpop.permute.xlu0 %1092  ;;  %1617 = vpow2.f32 %v791_v29  ;;  %v2785_v29 = vsub.f32 %v2174_v28, %v2179_v36 }
 0x3db   :  { %1619 = vpow2.f32 %v413_v23  ;;  %v580_v23 = vpop.permute.xlu2 %579  ;;  %vm1097_vm6 = vcmp.eq.s32.totalorder %v1951_v63, %v2406_v21 }
 0x3dc   :  { %1621 = vpow2.f32 %v415_v19  ;;  %v485_v9 = vmul.f32 1.442695, %v2785_v29 }
 0x3dd   :  { %v1612_v25 = vpop.eup %1611  ;;  %1623 = vpow2.f32 %v487_v22 }
 0x3de   :  { %889 = vrot.lane.b32.xlu1 %v2336_v30, %s1823_s20  ;;  %725 = vrot.lane.b32.xlu0 %v1612_v25, %s1813_s16  ;;  %v1614_v13 = vpop.eup %1613  ;;  %v555_v25 = vsub.f32 %v2179_v36, %v2219_v32  ;;  %1625 = vpow2.f32 %v485_v9  ;;  %v699_v36 = vsub.f32 %v2238_v57, %v2254_v62 }
 0x3df   :  { %v273_v51 = vmul.f32 %v1614_v13, %v225_v3  ;;  %v1616_v55 = vpop.eup %1615  ;;  %v556_v3 = vsub.f32 %v2214_v1, %v2223_v47 }
 0x3e0   :  { %v1618_v46 = vpop.eup %1617  ;;  %v557_v26 = vmul.f32 1.442695, %v555_v25  ;;  %v628_v25 = vsub.f32 %v2223_v47, %v2294_v14 }
 0x3e1   :  { %v1620_v4 = vpop.eup %1619 }
 0x3e2   :  { %v1622_v27 = vpop.eup %1621  ;;  %1627 = vpow2.f32 %v557_v26 }
 0x3e3   :  { %v292_v39 = vpop.permute.xlu0 %291  ;;  %v1624_v34 = vpop.eup %1623 }
 0x3e4   :  { %v297_v49 = vadd.f32 %v292_v39, %v273_v51  ;;  %v559_v39 = vmul.f32 1.442695, %v556_v3 }
 0x3e6   :  { %v345_v59 = vmul.f32 %v1616_v55, %v297_v49  ;;  %797 = vrot.lane.b32.xlu0 %v1618_v46, %s1816_s18  ;;  %v884_v55 = vsel %vm882_vm1, %v1967_v10, 0.0  ;;  %v701_v46 = vmul.f32 1.442695, %v699_v36 }
 0x3e8   :  { %v369_v12 = vadd.f32 %v2376_v50, %v345_v59 }
 0x3ea   :  { %v417_v38 = vmul.f32 %v1620_v4, %v369_v12 }
 0x3eb   :  { %v508_v44 = vpop.permute.xlu0 %507 }
 0x3ec   :  { %v1021_v7 = vpop.permute.xlu1 %1020 }
 0x3ed   :  { %vm1025_vm0 = vcmp.eq.s32.totalorder %v1951_v63, %v1021_v7  ;;  %v883_v7 = vsel %vm881_vm2, %v1956_v2, 0.0 }
 0x3ee   :  { %v1027_v0 = vsel %vm1025_vm0, %v1956_v2, 0.0 }
 0x3ef   :  { %1029 = vadd.xlane.f32.xlu2 %v1027_v0 }
 0x3f3   :  { %v366_v58 = vpop.permute.xlu0 %365 }
 0x3f4   :  { %v370_v50 = vadd.f32 %v366_v58, %v346_v24  ;;  %v627_v24 = vsub.f32 %v2219_v32, %v2238_v57  ;;  %v1626_v32 = vpop.eup %1625  ;;  %v652_v57 = vpop.permute.xlu2 %651 }
 0x3f5   :  { %v2424_v43 = vpop.permute.xlu1 %1167  ;;  %v1628_v59 = vpop.eup %1627 }
 0x3f6   :  { %v418_v33 = vmul.f32 %v1622_v27, %v370_v50  ;;  %v629_v28 = vmul.f32 1.442695, %v627_v24  ;;  %v956_v27 = vsel %vm954_vm3, %v1967_v10, 0.0  ;;  %vm1170_vm5 = vcmp.eq.s32.totalorder %v1951_v63, %v2424_v43 }
 0x3f7   :  { %v631_v24 = vmul.f32 1.442695, %v628_v25  ;;  %v772_v43 = vsub.f32 %v2297_v42, %v2300_v18 }
 0x3f8   :  { %1629 = vpow2.f32 %v629_v28 }
 0x3f9   :  { %1631 = vpow2.f32 %v559_v39 }
 0x3fa   :  { %1633 = vpow2.f32 %v701_v46 }
 0x3fb   :  { %v438_v60 = vpop.permute.xlu0 %437 }
 0x3fc   :  { %v442_v40 = vadd.f32 %v438_v60, %v418_v33  ;;  %v724_v8 = vpop.permute.xlu2 %723  ;;  %v771_v60 = vsub.f32 %v2254_v62, %v2285_v15  ;;  %v1172_v62 = vsel %vm1170_vm5, %v1967_v10, 0.0 }
 0x3fe   :  { %v2431_v13 = vpop.permute.xlu1 %1239  ;;  %v490_v53 = vmul.f32 %v1624_v34, %v442_v40  ;;  %v773_v40 = vmul.f32 1.442695, %v771_v60 }
 0x3ff   :  { %vm1242_vm8 = vcmp.eq.s32.totalorder %v1951_v63, %v2431_v13  ;;  %v1243_v13 = vsel %vm1241_vm11, %v1956_v2, 0.0 }
 0x400   :  { %1635 = vpow2.f32 %v773_v40 }
 0x401   :  { %1637 = vpow2.f32 %v631_v24 }
 0x404   :  { %v820_v21 = vpop.permute.xlu2 %819 }
 0x405   :  { %vm822_vm12 = vcmp.eq.s32.totalorder %v2344_v17, %v820_v21 }
 0x406   :  { %v436_v51 = vpop.permute.xlu1 %435 }
 0x407   :  { %v441_v49 = vadd.f32 %v436_v51, %v417_v38  ;;  %1105 = vrot.lane.b32.xlu2 %v2336_v30, %s1825_s22  ;;  %v1630_v38 = vpop.eup %1629  ;;  %v775_v51 = vmul.f32 1.442695, %v772_v43 }
 0x408   :  { %887 = vadd.xlane.f32.xlu1 %v884_v55  ;;  %v1632_v0 = vpop.eup %1631 }
 0x409   :  { %v489_v1 = vmul.f32 %v1626_v32, %v441_v49  ;;  %v1634_v50 = vpop.eup %1633 }
 0x40a   :  { %v1636_v34 = vpop.eup %1635 }
 0x40b   :  { %v513_v61 = vadd.f32 %v508_v44, %v489_v1  ;;  %v1638_v28 = vpop.eup %1637 }
 0x40d   :  { %v561_v12 = vmul.f32 %v1628_v59, %v513_v61  ;;  %v1028_v61 = vsel %vm1026_vm7, %v1967_v10, 0.0 }
 0x40e   :  { %v510_v4 = vpop.permute.xlu1 %509 }
 0x40f   :  { %v585_v31 = vadd.f32 %v580_v23, %v561_v12  ;;  %v514_v19 = vadd.f32 %v510_v4, %v490_v53  ;;  %v700_v53 = vsub.f32 %v2294_v14, %v2297_v42  ;;  %v1099_v42 = vsel %vm1097_vm6, %v1956_v2, 0.0  ;;  %v892_v12 = vpop.permute.xlu2 %891 }
 0x410   :  { %885 = vadd.xlane.f32.xlu0 %v883_v7  ;;  %v1244_v4 = vsel %vm1242_vm8, %v1967_v10, 0.0  ;;  %v1171_v10 = vsel %vm1169_vm10, %v1956_v2, 0.0  ;;  %vm894_vm14 = vcmp.eq.s32.totalorder %v2344_v17, %v892_v12  ;;  %vm1315_vm8 = vcmp.ne.s32.totalorder %v2336_v30, 4294967196 }
 0x411   :  { %v633_v58 = vmul.f32 %v1630_v38, %v585_v31  ;;  %v562_v6 = vmul.f32 %v1632_v0, %v514_v19  ;;  %v703_v26 = vmul.f32 1.442695, %v700_v53  ;;  %v1454_v41 = vsel %vm894_vm14, 1.0, %v1805_v35 }
 0x412   :  { %v900_v37 = vmul.f32 1000000.0, %v1454_v41  ;;  %vm1351_vm10 = vcmask 7168  }
 0x413   :  { %v657_v22 = vadd.f32 %v652_v57, %v633_v58  ;;  %1639 = vpow2.f32 %v703_v26 }
 0x414   :  { %1641 = vpow2.f32 %v775_v51 }
 0x415   :  { %v705_v44 = vmul.f32 %v1634_v50, %v657_v22  ;;  %v1452_v22 = vsel %vm822_vm12, 1.0, %v1805_v35 }
 0x417   :  { %v729_v33 = vadd.f32 %v724_v8, %v705_v44  ;;  %v962_v11 = vpop.permute.xlu2 %961  ;;  %v828_v44 = vmul.f32 1000000.0, %v1452_v22 }
 0x418   :  { %959 = vadd.xlane.f32.xlu0 %v956_v27  ;;  %vm965_vm15 = vcmp.eq.s32.totalorder %v2336_v30, %v962_v11 }
 0x419   :  { %v777_v29 = vmul.f32 %v1636_v34, %v729_v33  ;;  %v1640_v47 = vpop.eup %1639  ;;  %v830_v63 = vsub.f32 %v2368_v45, %v828_v44  ;;  %v1455_v45 = vsel %vm965_vm15, 1.0, %v1805_v35 }
 0x41a   :  { %v1642_v1 = vpop.eup %1641 }
 0x41b   :  { %v2515_v5 = vmul.f32 1.4285715, %v830_v63 }
 0x41f   :  { %v964_v38 = vpop.permute.xlu2 %963 }
 0x420   :  { %vm966_vm9 = vcmp.eq.s32.totalorder %v2344_v17, %v964_v38 }
 0x421   :  { %1033 = vrot.lane.b32.xlu1 %v2336_v30, %s1826_s23  ;;  %v1456_v19 = vsel %vm966_vm9, 1.0, %v1805_v35  ;;  %vm1316_vm9 = vcmp.ne.s32.totalorder %v2344_v17, 4294967196 }
 0x422   :  { %v972_v7 = vmul.f32 1000000.0, %v1456_v19 }
 0x429   :  { %1107 = vrot.lane.b32.xlu1 %v2344_v17, %s1825_s22 }
 0x42c   :  { %1035 = vrot.lane.b32.xlu0 %v2344_v17, %s1826_s23 }
 0x430   :  { %1103 = vadd.xlane.f32.xlu2 %v1100_v20 }
 0x438   :  { %1175 = vadd.xlane.f32.xlu2 %v1172_v62  ;;  %v796_v9 = vpop.permute.xlu1 %795 }
 0x439   :  { %v2466_v56 = vadd.f32 %v796_v9, %v777_v29  ;;  %v971_v29 = vmul.f32 1000000.0, %v1455_v45 }
 0x440   :  { %v582_v23 = vpop.permute.xlu1 %581 }
 0x441   :  { %v586_v3 = vadd.f32 %v582_v23, %v562_v6 }
 0x443   :  { %v634_v36 = vmul.f32 %v1638_v28, %v586_v3 }
 0x444   :  { %v958_v27 = vpop.xlane.xlu2 %957 }
 0x445   :  { %v973_v9 = vsub.f32 %v958_v27, %v971_v29 }
 0x447   :  { %v2531_v53 = vmul.f32 1.4285715, %v973_v9 }
 0x448   :  { %v654_v39 = vpop.permute.xlu1 %653 }
 0x449   :  { %v658_v55 = vadd.f32 %v654_v39, %v634_v36 }
 0x44b   :  { %v706_v49 = vmul.f32 %v1640_v47, %v658_v55 }
 0x450   :  { %1249 = vrot.lane.b32.xlu2 %v2336_v30, %s1827_s24  ;;  %v726_v14 = vpop.permute.xlu0 %725  ;;  %v890_v50 = vpop.permute.xlu1 %889 }
 0x451   :  { %v730_v32 = vadd.f32 %v726_v14, %v706_v49  ;;  %vm893_vm13 = vcmp.eq.s32.totalorder %v2336_v30, %v890_v50 }
 0x452   :  { %v1453_v2 = vsel %vm893_vm13, 1.0, %v1805_v35 }
 0x453   :  { %1101 = vadd.xlane.f32.xlu1 %v1099_v42  ;;  %v778_v46 = vmul.f32 %v1642_v1, %v730_v32  ;;  %v899_v16 = vmul.f32 1000000.0, %v1453_v2 }
 0x456   :  { %1031 = vadd.xlane.f32.xlu0 %v1028_v61 }
 0x458   :  { %v798_v59 = vpop.permute.xlu0 %797 }
 0x459   :  { %v2479_v57 = vadd.f32 %v798_v59, %v778_v46 }
 0x462   :  { %v1030_v34 = vpop.xlane.xlu2 %1029 }
 0x46a   :  { %1177 = vrot.lane.b32.xlu0 %v2336_v30, %s1828_s25  ;;  %v1106_v24 = vpop.permute.xlu2 %1105 }
 0x46b   :  { %vm1109_vm1 = vcmp.eq.s32.totalorder %v2336_v30, %v1106_v24 }
 0x46c   :  { %1179 = vrot.lane.b32.xlu1 %v2344_v17, %s1828_s25  ;;  %v1459_v28 = vsel %vm1109_vm1, 1.0, %v1805_v35 }
 0x46d   :  { %v1115_v55 = vmul.f32 1000000.0, %v1459_v28 }
 0x474   :  { %1251 = vrot.lane.b32.xlu1 %v2344_v17, %s1827_s24 }
 0x479   :  { %1247 = vadd.xlane.f32.xlu2 %v1244_v4 }
 0x47b   :  { %v888_v8 = vpop.xlane.xlu1 %887 }
 0x47c   :  { %v902_v60 = vsub.f32 %v888_v8, %v900_v37 }
 0x47e   :  { %v2523_v62 = vmul.f32 1.4285715, %v902_v60 }
 0x483   :  { %v886_v31 = vpop.xlane.xlu0 %885 }
 0x484   :  { %v901_v33 = vsub.f32 %v886_v31, %v899_v16 }
 0x486   :  { %v2521_v40 = vmul.f32 1.4285715, %v901_v33 }
 0x48b   :  { %v960_v0 = vpop.xlane.xlu0 %959 }
 0x48c   :  { %v974_v58 = vsub.f32 %v960_v0, %v972_v7 }
 0x48e   :  { %v2491_v6 = vmul.f32 1.4285715, %v974_v58 }
 0x491   :  { %981 = vrot.lane.b32.xlu2 %v2491_v6, %s1829_s26 }
 0x493   :  { %v1034_v20 = vpop.permute.xlu1 %1033 }
 0x494   :  { %1173 = vadd.xlane.f32.xlu0 %v1171_v10  ;;  %vm1037_vm0 = vcmp.eq.s32.totalorder %v2336_v30, %v1034_v20 }
 0x495   :  { %v1457_v25 = vsel %vm1037_vm0, 1.0, %v1805_v35 }
 0x496   :  { %v1043_v26 = vmul.f32 1000000.0, %v1457_v25 }
 0x498   :  { %v1045_v43 = vsub.f32 %v1030_v34, %v1043_v26 }
 0x49a   :  { %v2539_v51 = vmul.f32 1.4285715, %v1045_v43 }
 0x49b   :  { %v1108_v23 = vpop.permute.xlu1 %1107 }
 0x49c   :  { %vm1110_vm3 = vcmp.eq.s32.totalorder %v2344_v17, %v1108_v23 }
 0x49d   :  { %v1460_v1 = vsel %vm1110_vm3, 1.0, %v1805_v35 }
 0x49e   :  { %1245 = vadd.xlane.f32.xlu1 %v1243_v13  ;;  %v1036_v3 = vpop.permute.xlu0 %1035  ;;  %v1116_v61 = vmul.f32 1000000.0, %v1460_v1 }
 0x49f   :  { %vm1038_vm2 = vcmp.eq.s32.totalorder %v2344_v17, %v1036_v3 }
 0x4a0   :  { %v1458_v36 = vsel %vm1038_vm2, 1.0, %v1805_v35 }
 0x4a1   :  { %v1044_v47 = vmul.f32 1000000.0, %v1458_v36 }
 0x4a3   :  { %v1104_v46 = vpop.xlane.xlu2 %1103 }
 0x4a4   :  { %v1118_v21 = vsub.f32 %v1104_v46, %v1116_v61 }
 0x4a6   :  { %v2553_v12 = vmul.f32 1.4285715, %v1118_v21 }
 0x4a8   :  { %835 = vrot.lane.b32.xlu0 %v2506_v48, %s1830_s27 }
 0x4ab   :  { %v1176_v31 = vpop.xlane.xlu2 %1175 }
 0x4b0   :  { %837 = vrot.lane.b32.xlu0 %v2515_v5, %s1830_s27 }
 0x4b3   :  { %v1250_v10 = vpop.permute.xlu2 %1249 }
 0x4b4   :  { %vm1253_vm7 = vcmp.eq.s32.totalorder %v2336_v30, %v1250_v10 }
 0x4b5   :  { %v1463_v27 = vsel %vm1253_vm7, 1.0, %v1805_v35 }
 0x4b6   :  { %v1259_v37 = vmul.f32 1000000.0, %v1463_v27 }
 0x4b7   :  { %907 = vrot.lane.b32.xlu1 %v2521_v40, %s1831_s28 }
 0x4b8   :  { %909 = vrot.lane.b32.xlu0 %v2523_v62, %s1831_s28 }
 0x4c0   :  { %979 = vrot.lane.b32.xlu0 %v2531_v53, %s1829_s26 }
 0x4c6   :  { %v1102_v39 = vpop.xlane.xlu1 %1101 }
 0x4c7   :  { %v1117_v14 = vsub.f32 %v1102_v39, %v1115_v55 }
 0x4c8   :  { %1051 = vrot.lane.b32.xlu0 %v2539_v51, %s1832_s1 }
 0x4c9   :  { %v1032_v49 = vpop.xlane.xlu0 %1031  ;;  %v2547_v59 = vmul.f32 1.4285715, %v1117_v14 }
 0x4ca   :  { %v1046_v32 = vsub.f32 %v1032_v49, %v1044_v47 }
 0x4cc   :  { %v2545_v42 = vmul.f32 1.4285715, %v1046_v32 }
 0x4ce   :  { %1053 = vrot.lane.b32.xlu1 %v2545_v42, %s1832_s1 }
 0x4d0   :  { %1123 = vrot.lane.b32.xlu0 %v2547_v59, %s1833_s2 }
 0x4d6   :  { %1125 = vrot.lane.b32.xlu1 %v2553_v12, %s1833_s2 }
 0x4dc   :  { %v1178_v0 = vpop.permute.xlu0 %1177 }
 0x4dd   :  { %vm1181_vm5 = vcmp.eq.s32.totalorder %v2336_v30, %v1178_v0 }
 0x4de   :  { %v1180_v11 = vpop.permute.xlu1 %1179  ;;  %v1461_v13 = vsel %vm1181_vm5, 1.0, %v1805_v35 }
 0x4df   :  { %vm1182_vm4 = vcmp.eq.s32.totalorder %v2344_v17, %v1180_v11  ;;  %v1187_v22 = vmul.f32 1000000.0, %v1461_v13 }
 0x4e0   :  { %v1462_v4 = vsel %vm1182_vm4, 1.0, %v1805_v35 }
 0x4e1   :  { %v1188_v38 = vmul.f32 1000000.0, %v1462_v4 }
 0x4e3   :  { %v1190_v19 = vsub.f32 %v1176_v31, %v1188_v38 }
 0x4e5   :  { %v2559_v7 = vmul.f32 1.4285715, %v1190_v19 }
 0x4e6   :  { %v1252_v58 = vpop.permute.xlu1 %1251 }
 0x4e7   :  { %1197 = vrot.lane.b32.xlu2 %v2559_v7, %s1834_s29  ;;  %vm1254_vm6 = vcmp.eq.s32.totalorder %v2344_v17, %v1252_v58 }
 0x4e8   :  { %v1464_v50 = vsel %vm1254_vm6, 1.0, %v1805_v35 }
 0x4e9   :  { %v1260_v2 = vmul.f32 1000000.0, %v1464_v50 }
 0x4ec   :  { %v1248_v8 = vpop.xlane.xlu2 %1247 }
 0x4ed   :  { %v1262_v16 = vsub.f32 %v1248_v8, %v1260_v2 }
 0x4ef   :  { %v2573_v60 = vmul.f32 1.4285715, %v1262_v16 }
 0x4f4   :  { %v982_v47 = vpop.permute.xlu2 %981 }
 0x507   :  { %v1174_v44 = vpop.xlane.xlu0 %1173 }
 0x508   :  { %v1189_v63 = vsub.f32 %v1174_v44, %v1187_v22 }
 0x50a   :  { %v2568_v41 = vmul.f32 1.4285715, %v1189_v63 }
 0x50c   :  { %1195 = vrot.lane.b32.xlu0 %v2568_v41, %s1834_s29 }
 0x511   :  { %v1246_v33 = vpop.xlane.xlu1 %1245 }
 0x512   :  { %v1261_v45 = vsub.f32 %v1246_v33, %v1259_v37 }
 0x514   :  { %v2575_v20 = vmul.f32 1.4285715, %v1261_v45  ;;  %1269 = vrot.lane.b32.xlu0 %v2573_v60, %s1835_s30 }
 0x516   :  { %1267 = vrot.lane.b32.xlu1 %v2575_v20, %s1835_s30 }
 0x51a   :  { %v836_v34 = vpop.permute.xlu0 %835 }
 0x51b   :  { %v2582_v29 = vmax.f32 %v2285_v15, %v836_v34 }
 0x51d   :  { %v843_v9 = vsub.f32 %v2285_v15, %v2582_v29  ;;  %853 = vrot.lane.b32.xlu2 %v2582_v29, %s1814_s17 }
 0x51f   :  { %v845_v25 = vmul.f32 1.442695, %v843_v9 }
 0x521   :  { %1643 = vpow2.f32 %v845_v25 }
 0x522   :  { %v838_v24 = vpop.permute.xlu0 %837 }
 0x523   :  { %v2589_v26 = vmax.f32 %v2300_v18, %v838_v24 }
 0x525   :  { %v844_v23 = vsub.f32 %v2300_v18, %v2589_v26  ;;  %855 = vrot.lane.b32.xlu1 %v2589_v26, %s1814_s17 }
 0x527   :  { %v1644_v3 = vpop.eup %1643  ;;  %v847_v43 = vmul.f32 1.442695, %v844_v23 }
 0x528   :  { %v2596_v28 = vmul.f32 %v1644_v3, %v2466_v56 }
 0x529   :  { %v908_v15 = vpop.permute.xlu1 %907  ;;  %1645 = vpow2.f32 %v847_v43 }
 0x52a   :  { %v2599_v36 = vmax.f32 %v2582_v29, %v908_v15  ;;  %v910_v39 = vpop.permute.xlu0 %909 }
 0x52b   :  { %v2602_v55 = vmax.f32 %v2589_v26, %v910_v39 }
 0x52c   :  { %v915_v18 = vsub.f32 %v2582_v29, %v2599_v36  ;;  %925 = vrot.lane.b32.xlu0 %v2599_v36, %s1817_s19  ;;  %v1321_v29 = vld [vmem:[%s2779_s3] sm:$0xff] }
 0x52d   :  { %v916_v56 = vsub.f32 %v2589_v26, %v2602_v55  ;;  %927 = vrot.lane.b32.xlu2 %v2602_v55, %s1817_s19  ;;  %v2613_v49 = vmax.f32 %v2602_v55, %v982_v47 }
 0x52e   :  { %v917_v30 = vmul.f32 1.442695, %v915_v18 }
 0x52f   :  { %v1646_v14 = vpop.eup %1645  ;;  %v988_v32 = vsub.f32 %v2602_v55, %v2613_v49  ;;  %v1322_v55 = vld [vmem:[%s2779_s3 + $0x8] sm:$0xff]  ;;  %s1836_s3 = smov [#allocation7]  }
 0x530   :  { %v2618_v1 = vmul.f32 %v1646_v14, %v2479_v57 }
 0x531   :  { %v991_v26 = vmul.f32 1.442695, %v988_v32 }
 0x532   :  { %v980_v46 = vpop.permute.xlu0 %979 }
 0x533   :  { %v2621_v61 = vmax.f32 %v2599_v36, %v980_v46 }
 0x534   :  { %999 = vrot.lane.b32.xlu0 %v2613_v49, %s1823_s20 }
 0x535   :  { %v987_v21 = vsub.f32 %v2599_v36, %v2621_v61  ;;  %997 = vrot.lane.b32.xlu1 %v2621_v61, %s1823_s20 }
 0x537   :  { %v989_v32 = vmul.f32 1.442695, %v987_v21 }
 0x53a   :  { %v1052_v11 = vpop.permute.xlu0 %1051 }
 0x53b   :  { %v2630_v4 = vmax.f32 %v2621_v61, %v1052_v11 }
 0x53d   :  { %v1059_v57 = vsub.f32 %v2621_v61, %v2630_v4  ;;  %1069 = vrot.lane.b32.xlu2 %v2630_v4, %s1824_s21 }
 0x540   :  { %v1054_v38 = vpop.permute.xlu1 %1053 }
 0x541   :  { %v2637_v31 = vmax.f32 %v2613_v49, %v1054_v38  ;;  %v1198_v50 = vpop.permute.xlu2 %1197 }
 0x542   :  { %v1124_v19 = vpop.permute.xlu0 %1123 }
 0x543   :  { %v1060_v0 = vsub.f32 %v2613_v49, %v2637_v31  ;;  %v2642_v58 = vmax.f32 %v2630_v4, %v1124_v19  ;;  %1071 = vrot.lane.b32.xlu1 %v2637_v31, %s1824_s21 }
 0x545   :  { %v1131_v10 = vsub.f32 %v2630_v4, %v2642_v58  ;;  %1141 = vrot.lane.b32.xlu0 %v2642_v58, %s1826_s23 }
 0x548   :  { %v1126_v13 = vpop.permute.xlu1 %1125 }
 0x549   :  { %v2651_v22 = vmax.f32 %v2637_v31, %v1126_v13 }
 0x54b   :  { %v1132_v44 = vsub.f32 %v2637_v31, %v2651_v22  ;;  %1143 = vrot.lane.b32.xlu2 %v2651_v22, %s1826_s23  ;;  %v2658_v63 = vmax.f32 %v2651_v22, %v1198_v50 }
 0x54d   :  { %1215 = vrot.lane.b32.xlu0 %v2658_v63, %s1825_s22  ;;  %v1204_v2 = vsub.f32 %v2651_v22, %v2658_v63  ;;  %v1135_v36 = vmul.f32 1.442695, %v1132_v44 }
 0x54f   :  { %v1207_v4 = vmul.f32 1.442695, %v1204_v2 }
 0x577   :  { %v854_v8 = vpop.permute.xlu2 %853 }
 0x578   :  { %v859_v27 = vsub.f32 %v2506_v48, %v854_v8 }
 0x57a   :  { %v861_v16 = vmul.f32 1.442695, %v859_v27 }
 0x57c   :  { %1647 = vpow2.f32 %v861_v16 }
 0x57e   :  { %v1196_v37 = vpop.permute.xlu0 %1195 }
 0x57f   :  { %v2666_v33 = vmax.f32 %v2642_v58, %v1196_v37 }
 0x581   :  { %v1203_v45 = vsub.f32 %v2642_v58, %v2666_v33  ;;  %1213 = vrot.lane.b32.xlu1 %v2666_v33, %s1825_s22 }
 0x582   :  { %v1648_v34 = vpop.eup %1647 }
 0x583   :  { %867 = vrot.lane.b32.xlu0 %v1648_v34, %s1830_s27 }
 0x586   :  { %v1270_v9 = vpop.permute.xlu0 %1269 }
 0x587   :  { %v2674_v25 = vmax.f32 %v2658_v63, %v1270_v9  ;;  %v928_v48 = vpop.permute.xlu2 %927 }
 0x588   :  { %v932_v24 = vsub.f32 %v2523_v62, %v928_v48  ;;  %v1268_v23 = vpop.permute.xlu1 %1267 }
 0x589   :  { %v2678_v3 = vmax.f32 %v2666_v33, %v1268_v23  ;;  %1287 = vrot.lane.b32.xlu1 %v2674_v25, %s1828_s25  ;;  %v1276_v2 = vsub.f32 %v2658_v63, %v2674_v25 }
 0x58a   :  { %v935_v43 = vmul.f32 1.442695, %v932_v24 }
 0x58b   :  { %1285 = vrot.lane.b32.xlu2 %v2678_v3, %s1828_s25  ;;  %v1275_v58 = vsub.f32 %v2666_v33, %v2678_v3 }
 0x58c   :  { %1649 = vpow2.f32 %v935_v43 }
 0x592   :  { %v1650_v15 = vpop.eup %1649 }
 0x593   :  { %941 = vrot.lane.b32.xlu0 %v1650_v15, %s1831_s28 }
 0x597   :  { %v856_v39 = vpop.permute.xlu1 %855  ;;  %v1070_v47 = vpop.permute.xlu2 %1069 }
 0x598   :  { %v860_v14 = vsub.f32 %v2515_v5, %v856_v39  ;;  %v1075_v62 = vsub.f32 %v2539_v51, %v1070_v47 }
 0x59a   :  { %v863_v46 = vmul.f32 1.442695, %v860_v14  ;;  %v1077_v11 = vmul.f32 1.442695, %v1075_v62 }
 0x59c   :  { %1651 = vpow2.f32 %v863_v46 }
 0x59d   :  { %1653 = vpow2.f32 %v1077_v11 }
 0x59e   :  { %v926_v38 = vpop.permute.xlu0 %925 }
 0x59f   :  { %v931_v19 = vsub.f32 %v2521_v40, %v926_v38 }
 0x5a1   :  { %v933_v13 = vmul.f32 1.442695, %v931_v19 }
 0x5a2   :  { %v1652_v50 = vpop.eup %1651 }
 0x5a3   :  { %v1654_v8 = vpop.eup %1653  ;;  %1655 = vpow2.f32 %v933_v13  ;;  %869 = vrot.lane.b32.xlu2 %v1652_v50, %s1830_s27 }
 0x5a4   :  { %1083 = vrot.lane.b32.xlu0 %v1654_v8, %s1832_s1 }
 0x5a5   :  { %v1144_v27 = vpop.permute.xlu2 %1143 }
 0x5a6   :  { %v1148_v5 = vsub.f32 %v2553_v12, %v1144_v27  ;;  %v1000_v16 = vpop.permute.xlu0 %999 }
 0x5a7   :  { %v1004_v51 = vsub.f32 %v2491_v6, %v1000_v16  ;;  %v998_v37 = vpop.permute.xlu1 %997  ;;  %v919_v16 = vmul.f32 1.442695, %v916_v56 }
 0x5a8   :  { %v1151_v34 = vmul.f32 1.442695, %v1148_v5  ;;  %v1003_v9 = vsub.f32 %v2531_v53, %v998_v37 }
 0x5a9   :  { %v1656_v48 = vpop.eup %1655  ;;  %v1007_v40 = vmul.f32 1.442695, %v1004_v51 }
 0x5aa   :  { %1657 = vpow2.f32 %v1151_v34  ;;  %v1005_v24 = vmul.f32 1.442695, %v1003_v9  ;;  %939 = vrot.lane.b32.xlu1 %v1656_v48, %s1831_s28 }
 0x5ab   :  { %1659 = vpow2.f32 %v1007_v40 }
 0x5ac   :  { %1661 = vpow2.f32 %v1005_v24 }
 0x5b0   :  { %v1658_v23 = vpop.eup %1657 }
 0x5b1   :  { %v1660_v43 = vpop.eup %1659  ;;  %1157 = vrot.lane.b32.xlu0 %v1658_v23, %s1833_s2 }
 0x5b2   :  { %v1662_v12 = vpop.eup %1661  ;;  %1013 = vrot.lane.b32.xlu1 %v1660_v43, %s1829_s26 }
 0x5b3   :  { %1011 = vrot.lane.b32.xlu2 %v1662_v12, %s1829_s26 }
 0x5b5   :  { %v1072_v6 = vpop.permute.xlu1 %1071 }
 0x5b6   :  { %v1076_v53 = vsub.f32 %v2545_v42, %v1072_v6  ;;  %v2706_v42 = vsel %vm1315_vm8, 1.0, %v1805_v35 }
 0x5b7   :  { %v1142_v15 = vpop.permute.xlu0 %1141 }
 0x5b8   :  { %v1079_v39 = vmul.f32 1.442695, %v1076_v53  ;;  %v1147_v47 = vsub.f32 %v2547_v59, %v1142_v15  ;;  %v2709_v59 = vsel %vm1316_vm9, 1.0, %v1805_v35  ;;  %v1063_v15 = vmul.f32 1.442695, %v1060_v0 }
 0x5ba   :  { %1663 = vpow2.f32 %v1079_v39  ;;  %v1149_v14 = vmul.f32 1.442695, %v1147_v47  ;;  %v1133_v39 = vmul.f32 1.442695, %v1131_v10 }
 0x5bc   :  { %1665 = vpow2.f32 %v1149_v14 }
 0x5bf   :  { %v1216_v62 = vpop.permute.xlu0 %1215 }
 0x5c0   :  { %v1664_v46 = vpop.eup %1663  ;;  %v1220_v11 = vsub.f32 %v2559_v7, %v1216_v62  ;;  %v1561_v7 = vpack.i.bf16 %v2709_v59, %v2706_v42 }
 0x5c1   :  { %1085 = vrot.lane.b32.xlu2 %v1664_v46, %s1832_s1 }
 0x5c2   :  { %v1666_v38 = vpop.eup %1665  ;;  %v1223_v19 = vmul.f32 1.442695, %v1220_v11 }
 0x5c3   :  { %1155 = vrot.lane.b32.xlu1 %v1666_v38, %s1833_s2 }
 0x5c4   :  { %1667 = vpow2.f32 %v1223_v19 }
 0x5ca   :  { %v1668_v13 = vpop.eup %1667 }
 0x5cb   :  { %1229 = vrot.lane.b32.xlu1 %v1668_v13, %s1834_s29 }
 0x5d3   :  { %1562 = vrot.lane.b32.xlu1 %v1561_v7, %s1791_s5 }
 0x5e5   :  { %v1286_v50 = vpop.permute.xlu2 %1285 }
 0x5e6   :  { %v1291_v8 = vsub.f32 %v2575_v20, %v1286_v50 }
 0x5e8   :  { %v1293_v27 = vmul.f32 1.442695, %v1291_v8 }
 0x5ea   :  { %1669 = vpow2.f32 %v1293_v27 }
 0x5eb   :  { %1671 = vpow2.f32 %v917_v30 }
 0x5f0   :  { %v1670_v17 = vpop.eup %1669 }
 0x5f1   :  { %1299 = vrot.lane.b32.xlu0 %v1670_v17, %s1835_s30  ;;  %v1672_v18 = vpop.eup %1671  ;;  %v1205_v17 = vmul.f32 1.442695, %v1203_v45  ;;  %v1277_v45 = vmul.f32 1.442695, %v1275_v58 }
 0x5f3   :  { %v1214_v35 = vpop.permute.xlu1 %1213 }
 0x5f4   :  { %v1219_v5 = vsub.f32 %v2568_v41, %v1214_v35 }
 0x5f5   :  { %v868_v51 = vpop.permute.xlu0 %867 }
 0x5f6   :  { %v1221_v37 = vmul.f32 1.442695, %v1219_v5  ;;  %v873_v20 = vadd.f32 %v868_v51, %v2596_v28 }
 0x5f8   :  { %1673 = vpow2.f32 %v1221_v37  ;;  %v921_v34 = vmul.f32 %v1672_v18, %v873_v20 }
 0x5f9   :  { %1335 = vrot.lane.b32.xlu0 %v1321_v29, %s1791_s5  ;;  %1675 = vpow2.f32 %v919_v16  ;;  %v1279_v16 = vmul.f32 1.442695, %v1276_v2 }
 0x5fb   :  { %v1288_v9 = vpop.permute.xlu1 %1287 }
 0x5fc   :  { %v1292_v41 = vsub.f32 %v2573_v60, %v1288_v9 }
 0x5fd   :  { %v870_v48 = vpop.permute.xlu2 %869 }
 0x5fe   :  { %v1674_v56 = vpop.eup %1673  ;;  %v1295_v28 = vmul.f32 1.442695, %v1292_v41  ;;  %v874_v40 = vadd.f32 %v870_v48, %v2618_v1  ;;  %v1061_v1 = vmul.f32 1.442695, %v1059_v57 }
 0x5ff   :  { %v1676_v24 = vpop.eup %1675  ;;  %1227 = vrot.lane.b32.xlu2 %v1674_v56, %s1834_s29 }
 0x600   :  { %1677 = vpow2.f32 %v1295_v28  ;;  %v922_v23 = vmul.f32 %v1676_v24, %v874_v40 }
 0x601   :  { %1679 = vpow2.f32 %v991_v26 }
 0x602   :  { %1681 = vpow2.f32 %v989_v32 }
 0x603   :  { %1683 = vpow2.f32 %v1061_v1 }
 0x604   :  { %1685 = vpow2.f32 %v1063_v15 }
 0x605   :  { %v942_v43 = vpop.permute.xlu0 %941  ;;  %1687 = vpow2.f32 %v1133_v39 }
 0x606   :  { %v1678_v12 = vpop.eup %1677  ;;  %v946_v6 = vadd.f32 %v942_v43, %v922_v23  ;;  %1689 = vpow2.f32 %v1135_v36 }
 0x607   :  { %v1680_v53 = vpop.eup %1679  ;;  %1301 = vrot.lane.b32.xlu2 %v1678_v12, %s1835_s30  ;;  %1691 = vpow2.f32 %v1207_v4 }
 0x608   :  { %v994_v60 = vmul.f32 %v1680_v53, %v946_v6  ;;  %v1682_v62 = vpop.eup %1681  ;;  %1693 = vpow2.f32 %v1205_v17 }
 0x609   :  { %v1684_v57 = vpop.eup %1683  ;;  %1695 = vpow2.f32 %v1279_v16 }
 0x60a   :  { %v1686_v10 = vpop.eup %1685  ;;  %1697 = vpow2.f32 %v1277_v45 }
 0x60b   :  { %v1688_v13 = vpop.eup %1687 }
 0x60c   :  { %v1690_v8 = vpop.eup %1689 }
 0x60d   :  { %v1012_v61 = vpop.permute.xlu2 %1011  ;;  %v1692_v5 = vpop.eup %1691 }
 0x60e   :  { %v1694_v20 = vpop.eup %1693 }
 0x60f   :  { %1337 = vrot.lane.b32.xlu2 %v1322_v55, %s1791_s5  ;;  %v1696_v9 = vpop.eup %1695  ;;  %s1388_s5 = sshll.u32 %s1836_s3, 4  ;;  %s1389_s5 = int_to_ptr.vmem [resolvable:$true] %s1388_s5 }
 0x610   :  { %v1698_v56 = vpop.eup %1697 }
 0x616   :  { %v1084_v0 = vpop.permute.xlu0 %1083 }
 0x61b   :  { %v1086_v31 = vpop.permute.xlu2 %1085 }
 0x61c   :  { %v940_v47 = vpop.permute.xlu1 %939 }
 0x61d   :  { %v945_v14 = vadd.f32 %v940_v47, %v921_v34 }
 0x61f   :  { %v993_v46 = vmul.f32 %v1682_v62, %v945_v14 }
 0x621   :  { %v1017_v21 = vadd.f32 %v1012_v61, %v993_v46 }
 0x623   :  { %v1065_v49 = vmul.f32 %v1684_v57, %v1017_v21  ;;  %v1158_v30 = vpop.permute.xlu0 %1157 }
 0x624   :  { %v1014_v11 = vpop.permute.xlu1 %1013 }
 0x625   :  { %v1018_v38 = vadd.f32 %v1014_v11, %v994_v60  ;;  %v1089_v19 = vadd.f32 %v1084_v0, %v1065_v49 }
 0x627   :  { %v1066_v7 = vmul.f32 %v1686_v10, %v1018_v38  ;;  %v1137_v50 = vmul.f32 %v1688_v13, %v1089_v19 }
 0x629   :  { %v1090_v44 = vadd.f32 %v1086_v31, %v1066_v7 }
 0x62b   :  { %v1138_v27 = vmul.f32 %v1690_v8, %v1090_v44 }
 0x62d   :  { %v1162_v35 = vadd.f32 %v1158_v30, %v1138_v27  ;;  %v2786_v30 = vlaneseq }
 0x62f   :  { %v1210_v22 = vmul.f32 %v1692_v5, %v1162_v35  ;;  %v1377_v17 = vshrl.u32 %v2786_v30, 7 }
 0x631   :  { %vm1378_vm11 = vcmp.eq.s32.totalorder %v1377_v17, 0 }
 0x635   :  { %v1156_v51 = vpop.permute.xlu1 %1155 }
 0x636   :  { %v1161_v37 = vadd.f32 %v1156_v51, %v1137_v50 }
 0x638   :  { %v1209_v29 = vmul.f32 %v1694_v20, %v1161_v37 }
 0x63d   :  { %v1230_v18 = vpop.permute.xlu1 %1229 }
 0x63e   :  { %v1234_v34 = vadd.f32 %v1230_v18, %v1210_v22 }
 0x640   :  { %v1282_v41 = vmul.f32 %v1696_v9, %v1234_v34 }
 0x645   :  { %v1563_v12 = vpop.permute.xlu1 %1562 }
 0x646   :  { %v1565_v33 = vunpack.i.h.bf16 %v1563_v12  ;;  %v1564_v1 = vunpack.i.l.bf16 %v1563_v12 }
 0x659   :  { %v1228_v48 = vpop.permute.xlu2 %1227 }
 0x65a   :  { %v1233_v26 = vadd.f32 %v1228_v48, %v1209_v29 }
 0x65c   :  { %v1281_v63 = vmul.f32 %v1698_v56, %v1233_v26 }
 0x661   :  { %v1302_v28 = vpop.permute.xlu2 %1301 }
 0x662   :  { %v1306_v40 = vadd.f32 %v1302_v28, %v1282_v41 }
 0x663   :  { %v1300_v24 = vpop.permute.xlu0 %1299 }
 0x664   :  { %1699 = vlog2.f32 %v1306_v40  ;;  %v1305_v23 = vadd.f32 %v1300_v24, %v1281_v63 }
 0x666   :  { %1701 = vlog2.f32 %v1305_v23 }
 0x669   :  { %v1338_v39 = vpop.permute.xlu2 %1337 }
 0x66a   :  { %v1700_v43 = vpop.eup %1699 }
 0x66b   :  { %v1310_v6 = vmul.f32 0.6931472, %v1700_v43  ;;  %v1336_v62 = vpop.permute.xlu0 %1335 }
 0x66c   :  { %v1702_v53 = vpop.eup %1701 }
 0x66d   :  { %v1312_v60 = vadd.f32 %v1310_v6, %v2674_v25  ;;  %v1308_v55 = vmul.f32 0.6931472, %v1702_v53  ;;  %v1364_v25 = vsel %vm1351_vm10, %v2706_v42, 0.0 }
 0x66f   :  { %v1311_v32 = vadd.f32 %v1308_v55, %v2678_v3  ;;  %v1314_v15 = vsub.f32 %v1312_v60, %v2194_v52  ;;  %v1365_v3 = vsel %vm1351_vm10, %v2709_v59, 0.0 }
 0x670   :  { %v1366_v21 = vadd.f32 %v1365_v3, %v1364_v25 }
 0x671   :  { %v1332_v47 = vmul.f32 %v1565_v33, %v1314_v15  ;;  %v1313_v14 = vsub.f32 %v1311_v32, %v2157_v54 }
 0x673   :  { %v1342_v46 = vmul.f32 %v1338_v39, %v1332_v47  ;;  %v1331_v36 = vmul.f32 %v1564_v1, %v1313_v14 }
 0x675   :  { %v1341_v61 = vmul.f32 %v1336_v62, %v1331_v36  ;;  %1347 = vrot.lane.b32.xlu0 %v1342_v46, %s1806_s10 }
 0x677   :  { %1345 = vrot.lane.b32.xlu1 %v1341_v61, %s1806_s10 }
 0x6a1   :  { %1367 = vadd.xlane.f32.xlu1 %v1366_v21 }
 0x6e7   :  { %v1348_v52 = vpop.permute.xlu0 %1347 }
 0x6e8   :  { %v1353_v49 = vsel %vm1351_vm10, %v1348_v52, 0.0 }
 0x6e9   :  { %v1346_v57 = vpop.permute.xlu1 %1345 }
 0x6ea   :  { %v1352_v0 = vsel %vm1351_vm10, %v1346_v57, 0.0 }
 0x6eb   :  { %v1354_v54 = vadd.f32 %v1353_v49, %v1352_v0 }
 0x6ed   :  { %1355 = vadd.xlane.f32.xlu2 %v1354_v54 }
 0x714   :  { %v1368_v11 = vpop.xlane.xlu1 %1367 }
 0x715   :  { %v1369_v4 = vrot.slane %v1368_v11, 4 }
 0x717   :  { %v1370_v10 = vadd.f32 %v1369_v4, %v1368_v11 }
 0x719   :  { %v1371_v38 = vrot.slane %v1370_v10, 2 }
 0x71b   :  { %v1372_v50 = vadd.f32 %v1371_v38, %v1370_v10 }
 0x71d   :  { %v1373_v44 = vrot.slane %v1372_v50, 1 }
 0x71f   :  { %v1374_v27 = vadd.f32 %v1373_v44, %v1372_v50 }
 0x760   :  { %v1356_v19 = vpop.xlane.xlu2 %1355 }
 0x761   :  { %v1357_v13 = vrot.slane %v1356_v19, 4 }
 0x763   :  { %v1358_v7 = vadd.f32 %v1357_v13, %v1356_v19 }
 0x765   :  { %v1359_v31 = vrot.slane %v1358_v7, 2 }
 0x767   :  { %v1360_v42 = vadd.f32 %v1359_v31, %v1358_v7 }
 0x769   :  { %v1361_v59 = vrot.slane %v1360_v42, 1 }
 0x76b   :  { %v1362_v8 = vadd.f32 %v1361_v59, %v1360_v42 }
 0x76d   :  { %1475 = vpush %v1362_v8 }
 0x76e   :  { %1477 = vpush %v1374_v27 }
 0x79e   :  { %s1476_s12 = spop %1475 }
 0x79f   :  { %v1379_v35 = vstv %s1476_s12  ;;  %s1478_s13 = spop %1477 }
 0x7a0   :  { %v1380_v5 = vstv %s1478_s13 }
 0x7a1   :  { %v1381_v22 = vsel %vm1378_vm11, %v1379_v35, %v1380_v5 }
 0x7a2   :  { %1382 = vst [vmem:[#allocation7] sm:$0x3] %v1381_v22 }
 0x7a3   :  { %1393 = dma.vmem_to_hbm [thread:$0]  %s1389_s5, 32, %s1391_s11, [#allocation4]  }
 0x7a4   :  { %1781 = dma.done.wait [#allocation4], 32  }
 0x7a5   :  { %1782 = vsyncadd [#allocation4], 4294967264 }
 0x7a6   :  { %1398 = vsyncpa [#allocation3], 1 }
 0x7a7   :  { %1399 = vsyncpa [#allocation6], 1 }
 0x7a8   :  { %1400 = vsyncpa [#allocation4], 1 }

</bundles_post_ra>
